<compile_context>
chip_gen: v7x
topology: tpu7x:2x2x1
jax: 0.10.0
libtpu: 0.0.40
codegen_flags: <defaults>
</compile_context>

<pallas_src>
import functools

import jax
import jax.numpy as jnp
from jax.experimental import pallas as pl
from jax.experimental.pallas import tpu as pltpu


_IDX_MAP = {2: (lambda i: (0, 0)), 3: (lambda i: (0, 0, 0))}


def _fs(shape):
    """Full-array BlockSpec for a grid=(1,) pallas_call."""
    return pl.BlockSpec(shape, _IDX_MAP[len(shape)])


# ----------------------------------------------------------------------------
# Fused single-head self-attention MHA (+ optional residual + LayerNorm)
# ----------------------------------------------------------------------------
def _self_mha_kernel(*refs, N, T, D, scale, causal, add_ln, has_mask):
    x_ref, wqkv_ref, bqkv_ref, wo_ref, bo_ref = refs[:5]
    idx = 5
    if has_mask:
        mask_ref = refs[idx]
        idx += 1
    if add_ln:
        g_ref, b_ref = refs[idx], refs[idx + 1]
        idx += 2
    o_ref = refs[idx]

    x = x_ref[...]                                            # (N, T, D)
    xf = x.reshape(N * T, D)

    # One fused QKV projection: (N*T, D) @ (D, 3D); split stays in VMEM.
    qkv = jnp.dot(xf, wqkv_ref[...], preferred_element_type=jnp.float32) + bqkv_ref[...]
    q = qkv[:, :D].reshape(N, T, D)
    k = qkv[:, D:2 * D].reshape(N, T, D)
    v = qkv[:, 2 * D:].reshape(N, T, D)

    s = jnp.einsum("ntd,nsd->nts", q, k, preferred_element_type=jnp.float32) * scale
    if has_mask:
        s = s + mask_ref[...][None, :, :]
    elif causal:
        row = jax.lax.broadcasted_iota(jnp.int32, (T, T), 0)
        col = jax.lax.broadcasted_iota(jnp.int32, (T, T), 1)
        s = s + jnp.where(col > row, jnp.float32(-1e9), jnp.float32(0.0))[None, :, :]

    s = s - jnp.max(s, axis=-1, keepdims=True)
    p = jnp.exp(s)
    p = p / jnp.sum(p, axis=-1, keepdims=True)

    ctx = jnp.einsum("nts,nsd->ntd", p, v, preferred_element_type=jnp.float32)
    out = jnp.dot(ctx.reshape(N * T, D), wo_ref[...],
                  preferred_element_type=jnp.float32) + bo_ref[...]

    if add_ln:                                                # LN(x + attn(x))
        y = xf + out
        mu = jnp.mean(y, axis=-1, keepdims=True)
        var = jnp.mean((y - mu) ** 2, axis=-1, keepdims=True)
        out = (y - mu) * jax.lax.rsqrt(var + 1e-5) * g_ref[...] + b_ref[...]

    o_ref[...] = out.reshape(N, T, D)


def fused_self_mha(x, p, ln=None, mask=None, causal=False):
    N, T, D = x.shape
    scale = 1.0 / float(D) ** 0.5
    has_mask = mask is not None
    add_ln = ln is not None

    inputs = [x, p["w_qkv"], p["b_qkv"], p["w_out"], p["b_out"]]
    in_specs = [_fs((N, T, D)), _fs((D, 3 * D)), _fs((1, 3 * D)),
                _fs((D, D)), _fs((1, D))]
    if has_mask:
        inputs.append(mask)
        in_specs.append(_fs((T, T)))
    if add_ln:
        inputs += [ln[0], ln[1]]
        in_specs += [_fs((1, D)), _fs((1, D))]

    kernel = functools.partial(_self_mha_kernel, N=N, T=T, D=D, scale=scale,
                               causal=causal, add_ln=add_ln, has_mask=has_mask)
    return pl.pallas_call(
        kernel,
        out_shape=jax.ShapeDtypeStruct((N, T, D), jnp.float32),
        grid=(1,),
        in_specs=in_specs,
        out_specs=_fs((N, T, D)),
    )(*inputs)


# ----------------------------------------------------------------------------
# Fused single-head cross-attention MHA + residual + LayerNorm
# ----------------------------------------------------------------------------
def _cross_mha_kernel(x_ref, m_ref, wq_ref, bq_ref, wkv_ref, bkv_ref,
                      wo_ref, bo_ref, g_ref, b_ref, o_ref, *, B, T, S, D, scale):
    x = x_ref[...]                                            # (B, T, D)
    mem = m_ref[...]                                          # (B, S, D)
    xf = x.reshape(B * T, D)
    mf = mem.reshape(B * S, D)

    q = (jnp.dot(xf, wq_ref[...], preferred_element_type=jnp.float32)
         + bq_ref[...]).reshape(B, T, D)
    kv = jnp.dot(mf, wkv_ref[...], preferred_element_type=jnp.float32) + bkv_ref[...]
    k = kv[:, :D].reshape(B, S, D)
    v = kv[:, D:].reshape(B, S, D)

    s = jnp.einsum("btd,bsd->bts", q, k, preferred_element_type=jnp.float32) * scale
    s = s - jnp.max(s, axis=-1, keepdims=True)
    p = jnp.exp(s)
    p = p / jnp.sum(p, axis=-1, keepdims=True)

    ctx = jnp.einsum("bts,bsd->btd", p, v, preferred_element_type=jnp.float32)
    out = jnp.dot(ctx.reshape(B * T, D), wo_ref[...],
                  preferred_element_type=jnp.float32) + bo_ref[...]

    y = xf + out                                              # LN(x + cross_attn)
    mu = jnp.mean(y, axis=-1, keepdims=True)
    var = jnp.mean((y - mu) ** 2, axis=-1, keepdims=True)
    y = (y - mu) * jax.lax.rsqrt(var + 1e-5) * g_ref[...] + b_ref[...]
    o_ref[...] = y.reshape(B, T, D)


def fused_cross_mha(x, mem, p, ln):
    B, T, D = x.shape
    S = mem.shape[1]
    scale = 1.0 / float(D) ** 0.5
    wq, wkv = p["w_qkv"][:, :D], p["w_qkv"][:, D:]
    bq, bkv = p["b_qkv"][:, :D], p["b_qkv"][:, D:]
    kernel = functools.partial(_cross_mha_kernel, B=B, T=T, S=S, D=D, scale=scale)
    return pl.pallas_call(
        kernel,
        out_shape=jax.ShapeDtypeStruct((B, T, D), jnp.float32),
        grid=(1,),
        in_specs=[_fs((B, T, D)), _fs((B, S, D)),
                  _fs((D, D)), _fs((1, D)),
                  _fs((D, 2 * D)), _fs((1, 2 * D)),
                  _fs((D, D)), _fs((1, D)),
                  _fs((1, D)), _fs((1, D))],
        out_specs=_fs((B, T, D)),
    )(x, mem, wq, bq, wkv, bkv, p["w_out"], p["b_out"], ln[0], ln[1])


# ----------------------------------------------------------------------------
# Fused FFN (linear1 + ReLU + linear2) + residual + LayerNorm
# ----------------------------------------------------------------------------
def _ffn_kernel(x_ref, w1_ref, b1_ref, w2_ref, b2_ref, g_ref, b_ref, o_ref):
    x = x_ref[...]                                            # (M, D)
    h = jnp.maximum(
        jnp.dot(x, w1_ref[...], preferred_element_type=jnp.float32) + b1_ref[...], 0.0)
    h = jnp.dot(h, w2_ref[...], preferred_element_type=jnp.float32) + b2_ref[...]
    y = x + h
    mu = jnp.mean(y, axis=-1, keepdims=True)
    var = jnp.mean((y - mu) ** 2, axis=-1, keepdims=True)
    o_ref[...] = (y - mu) * jax.lax.rsqrt(var + 1e-5) * g_ref[...] + b_ref[...]


def fused_ffn(x2d, lp):
    M, D = x2d.shape
    DFF = lp["w1"].shape[1]
    return pl.pallas_call(
        _ffn_kernel,
        out_shape=jax.ShapeDtypeStruct((M, D), jnp.float32),
        grid=(1,),
        in_specs=[_fs((M, D)), _fs((D, DFF)), _fs((1, DFF)),
                  _fs((DFF, D)), _fs((1, D)), _fs((1, D)), _fs((1, D))],
        out_specs=_fs((M, D)),
    )(x2d, lp["w1"], lp["b1"], lp["w2"], lp["b2"], lp["norm3_w"], lp["norm3_b"])


# ----------------------------------------------------------------------------
# Fused "weights-only" quantizer attention + normalize + weighted sum
#   per batch element n:  p = softmax(q k^T / sqrt(D));  w = F.normalize(p.sum(0));
#   out[n] = w @ x[n]     (V projection and out-proj are never computed)
# ----------------------------------------------------------------------------
def _quantizer_kernel(x_ref, wqk_ref, bqk_ref, o_ref, *, Q, D, scale):
    x = x_ref[0]                                              # (Q, D)
    qk = jnp.dot(x, wqk_ref[...], preferred_element_type=jnp.float32) + bqk_ref[...]
    q = qk[:, :D]
    k = qk[:, D:]
    s = jnp.dot(q, k.T, preferred_element_type=jnp.float32) * scale   # (Q, Q)
    s = s - jnp.max(s, axis=-1, keepdims=True)
    p = jnp.exp(s)
    p = p / jnp.sum(p, axis=-1, keepdims=True)
    w = jnp.sum(p, axis=0, keepdims=True)                     # (1, Q): sum over queries
    w = w / jnp.maximum(jnp.sqrt(jnp.sum(w * w, axis=-1, keepdims=True)), 1e-12)
    o_ref[0] = jnp.dot(w, x, preferred_element_type=jnp.float32)      # (1, D)


def fused_quantizer_reduce(x1, p):
    N, Q, D = x1.shape
    scale = 1.0 / float(D) ** 0.5
    wqk = p["w_qkv"][:, :2 * D]
    bqk = p["b_qkv"][:, :2 * D]
    out = pl.pallas_call(
        functools.partial(_quantizer_kernel, Q=Q, D=D, scale=scale),
        out_shape=jax.ShapeDtypeStruct((N, 1, D), jnp.float32),
        grid=(N,),
        in_specs=[pl.BlockSpec((1, Q, D), lambda i: (i, 0, 0)),
                  pl.BlockSpec((D, 2 * D), lambda i: (0, 0)),
                  pl.BlockSpec((1, 2 * D), lambda i: (0, 0))],
        out_specs=pl.BlockSpec((1, 1, D), lambda i: (i, 0, 0)),
        compiler_params=pltpu.CompilerParams(dimension_semantics=("parallel",)),
    )(x1, wqk, bqk)
    return out.reshape(N, D)


# ----------------------------------------------------------------------------
# Module logic (glue in JAX under jit, compute in the fused Pallas kernels)
# ----------------------------------------------------------------------------
def decoder_layer(x, memory, lp, mask, causal):
    B, T, D = x.shape
    x = fused_self_mha(x, lp["self_attn"], ln=(lp["norm1_w"], lp["norm1_b"]),
                       mask=mask, causal=causal)
    x = fused_cross_mha(x, memory, lp["cross_attn"], ln=(lp["norm2_w"], lp["norm2_b"]))
    y = fused_ffn(x.reshape(B * T, D), lp)
    return y.reshape(B, T, D)


@functools.partial(jax.jit, static_argnames=("tgt_is_causal",))
def tokenformer_decoder_forward(tgt, memory, params, tgt_mask=None, tgt_is_causal=False):
    B, Q, T, D = tgt.shape
    tgt = tgt.astype(jnp.float32)
    memory = memory.astype(jnp.float32)

    # 'b q t d -> (b q) t d' ; token self-attention (output-only fused MHA)
    x0 = tgt.reshape(B * Q, T, D)
    x_tok = fused_self_mha(x0, params["token_attn"])

    # '(b q) t d -> (b t) q d'
    x1 = x_tok.reshape(B, Q, T, D).transpose(0, 2, 1, 3).reshape(B * T, Q, D)

    # quantizer attention weights -> F.normalize(sum over queries) -> weighted sum
    x2 = fused_quantizer_reduce(x1, params["quantizer_attn"])   # (B*T, D)
    x3 = x2.reshape(B, T, D)

    mask = None
    causal = False
    if tgt_mask is not None:
        m = jnp.asarray(tgt_mask)
        if m.dtype == jnp.bool_:
            m = jnp.where(m, jnp.float32(-1e9), jnp.float32(0.0))
        mask = m.astype(jnp.float32)
    elif tgt_is_causal:
        causal = True

    for lp in params["layers"]:
        x3 = decoder_layer(x3, memory, lp, mask, causal)
    return x3


# ----------------------------------------------------------------------------
# Deterministic parameter initialization (weights pre-transposed to (in, out),
# biases pre-reshaped to (1, out); shapes mirror the nn.Module __init__).
# ----------------------------------------------------------------------------
def init_mha_params(key, d):
    k1, k2, k3, k4 = jax.random.split(key, 4)
    return {
        "w_qkv": jax.random.normal(k1, (d, 3 * d), jnp.float32) * 0.05,
        "b_qkv": jax.random.normal(k2, (1, 3 * d), jnp.float32) * 0.01,
        "w_out": jax.random.normal(k3, (d, d), jnp.float32) * 0.05,
        "b_out": jax.random.normal(k4, (1, d), jnp.float32) * 0.01,
    }


def init_layer_params(key, d, dff):
    keys = jax.random.split(key, 6)
    return {
        "self_attn": init_mha_params(keys[0], d),
        "cross_attn": init_mha_params(keys[1], d),
        "w1": jax.random.normal(keys[2], (d, dff), jnp.float32) * 0.05,
        "b1": jax.random.normal(keys[3], (1, dff), jnp.float32) * 0.01,
        "w2": jax.random.normal(keys[4], (dff, d), jnp.float32) * 0.05,
        "b2": jax.random.normal(keys[5], (1, d), jnp.float32) * 0.01,
        "norm1_w": jnp.ones((1, d), jnp.float32), "norm1_b": jnp.zeros((1, d), jnp.float32),
        "norm2_w": jnp.ones((1, d), jnp.float32), "norm2_b": jnp.zeros((1, d), jnp.float32),
        "norm3_w": jnp.ones((1, d), jnp.float32), "norm3_b": jnp.zeros((1, d), jnp.float32),
    }


def init_params(key, d_model, dim_feedforward, num_layers):
    keys = jax.random.split(key, 2 + num_layers)
    return {
        "token_attn": init_mha_params(keys[0], d_model),
        "quantizer_attn": init_mha_params(keys[1], d_model),
        "layers": [init_layer_params(keys[2 + i], d_model, dim_feedforward)
                   for i in range(num_layers)],
    }


# ----------------------------------------------------------------------------
if __name__ == "__main__":
    B, Q, T, S, D = 2, 3, 8, 8, 32
    DFF, NUM_LAYERS = 64, 2

    root = jax.random.PRNGKey(0)
    k_params, k_tgt, k_mem = jax.random.split(root, 3)

    params = init_params(k_params, D, DFF, NUM_LAYERS)
    tgt = jax.random.normal(k_tgt, (B, Q, T, D), jnp.float32)
    memory = jax.random.normal(k_mem, (B, S, D), jnp.float32)

    out = tokenformer_decoder_forward(tgt, memory, params,
                                      tgt_mask=None, tgt_is_causal=False)
    out = jax.block_until_ready(out)

    assert out.shape == (B, T, D), out.shape
    assert bool(jnp.all(jnp.isfinite(out)))
    print("KERNEL_OK")
</pallas_src>

<mosaic_0001>
module attributes {stable_mosaic.version = 11 : i64} {
  func.func @_quantizer_kernel(%arg0: i32, %arg1: memref<1x3x32xf32, #tpu.memory_space<vmem>>, %arg2: memref<32x64xf32, #tpu.memory_space<vmem>>, %arg3: memref<1x64xf32, #tpu.memory_space<vmem>>, %arg4: memref<1x1x32xf32, #tpu.memory_space<vmem>>) attributes {dimension_semantics = [#tpu.dimension_semantics<parallel>], iteration_bounds = array<i64: 16>, scalar_prefetch = 0 : i64, scratch_operands = 0 : i64, tpu.core_type = #tpu.core_type<tc>, window_params = [{transform_indices = @transform_0, window_bounds = array<i64: 1, 3, 32>}, {pipeline_mode = #tpu.pipeline_mode<synchronous>, transform_indices = @transform_1, window_bounds = array<i64: 32, 64>}, {pipeline_mode = #tpu.pipeline_mode<synchronous>, transform_indices = @transform_2, window_bounds = array<i64: 1, 64>}, {transform_indices = @transform_3, window_bounds = array<i64: 1, 1, 32>}]} {
    %c0 = arith.constant 0 : index
    %c0_0 = arith.constant 0 : index
    %c0_1 = arith.constant 0 : index
    %0 = vector.load %arg1[%c0, %c0_0, %c0_1] : memref<1x3x32xf32, #tpu.memory_space<vmem>>, vector<1x3x32xf32>
    %1 = vector.shape_cast %0 : vector<1x3x32xf32> to vector<3x32xf32>
    %c0_2 = arith.constant 0 : index
    %c0_3 = arith.constant 0 : index
    %2 = vector.load %arg2[%c0_2, %c0_3] : memref<32x64xf32, #tpu.memory_space<vmem>>, vector<32x64xf32>
    %cst = arith.constant dense<0.000000e+00> : vector<3x64xf32>
    %3 = tpu.matmul %1, %2, %cst {dimension_numbers = #tpu.dot_dimension_numbers<[1], [0], [0], [1], [0, 0, 1, 1], [], []>} : vector<3x32xf32>, vector<32x64xf32>, vector<3x64xf32> -> vector<3x64xf32>
    %c0_4 = arith.constant 0 : index
    %c0_5 = arith.constant 0 : index
    %4 = vector.load %arg3[%c0_4, %c0_5] : memref<1x64xf32, #tpu.memory_space<vmem>>, vector<1x64xf32>
    %5 = vector.broadcast %4 : vector<1x64xf32> to vector<3x64xf32>
    %6 = arith.addf %3, %5 : vector<3x64xf32>
    %7 = vector.extract_strided_slice %6 {offsets = [0, 0], sizes = [3, 32], strides = [1, 1]} : vector<3x64xf32> to vector<3x32xf32>
    %8 = vector.extract_strided_slice %6 {offsets = [0, 32], sizes = [3, 32], strides = [1, 1]} : vector<3x64xf32> to vector<3x32xf32>
    %9 = tpu.transpose %8, [1, 0] : vector<3x32xf32> -> vector<32x3xf32>
    %cst_6 = arith.constant dense<0.000000e+00> : vector<3x3xf32>
    %10 = tpu.matmul %7, %9, %cst_6 {dimension_numbers = #tpu.dot_dimension_numbers<[1], [0], [0], [1], [0, 0, 1, 1], [], []>} : vector<3x32xf32>, vector<32x3xf32>, vector<3x3xf32> -> vector<3x3xf32>
    %cst_7 = arith.constant 0.176776692 : f32
    %11 = vector.broadcast %cst_7 : f32 to vector<3x3xf32>
    %12 = arith.mulf %10, %11 : vector<3x3xf32>
    %cst_8 = arith.constant dense<0xFF800000> : vector<3xf32>
    %13 = vector.multi_reduction <maximumf>, %12, %cst_8 [1] : vector<3x3xf32> to vector<3xf32>
    %14 = vector.shape_cast %13 : vector<3xf32> to vector<3x1xf32>
    %15 = vector.broadcast %14 : vector<3x1xf32> to vector<3x3xf32>
    %16 = arith.subf %12, %15 : vector<3x3xf32>
    %17 = math.exp %16 : vector<3x3xf32>
    %cst_9 = arith.constant dense<0.000000e+00> : vector<3xf32>
    %18 = vector.multi_reduction <add>, %17, %cst_9 [1] : vector<3x3xf32> to vector<3xf32>
    %19 = vector.shape_cast %18 : vector<3xf32> to vector<3x1xf32>
    %20 = vector.broadcast %19 : vector<3x1xf32> to vector<3x3xf32>
    %21 = arith.divf %17, %20 : vector<3x3xf32>
    %cst_10 = arith.constant dense<0.000000e+00> : vector<3xf32>
    %22 = vector.multi_reduction <add>, %21, %cst_10 [0] : vector<3x3xf32> to vector<3xf32>
    %23 = vector.shape_cast %22 : vector<3xf32> to vector<1x3xf32>
    %24 = arith.mulf %23, %23 : vector<1x3xf32>
    %cst_11 = arith.constant dense<0.000000e+00> : vector<1xf32>
    %25 = vector.multi_reduction <add>, %24, %cst_11 [1] : vector<1x3xf32> to vector<1xf32>
    %26 = vector.shape_cast %25 : vector<1xf32> to vector<1x1xf32>
    %27 = math.sqrt %26 : vector<1x1xf32>
    %cst_12 = arith.constant 9.99999996E-13 : f32
    %28 = vector.broadcast %cst_12 : f32 to vector<1x1xf32>
    %29 = arith.maximumf %27, %28 : vector<1x1xf32>
    %30 = vector.broadcast %29 : vector<1x1xf32> to vector<1x3xf32>
    %31 = arith.divf %23, %30 : vector<1x3xf32>
    %cst_13 = arith.constant dense<0.000000e+00> : vector<1x32xf32>
    %32 = tpu.matmul %31, %1, %cst_13 {dimension_numbers = #tpu.dot_dimension_numbers<[1], [0], [0], [1], [0, 0, 1, 1], [], []>} : vector<1x3xf32>, vector<3x32xf32>, vector<1x32xf32> -> vector<1x32xf32>
    %c0_14 = arith.constant 0 : index
    %c0_15 = arith.constant 0 : index
    %c0_16 = arith.constant 0 : index
    %33 = vector.load %arg4[%c0_14, %c0_15, %c0_16] : memref<1x1x32xf32, #tpu.memory_space<vmem>>, vector<1x1x32xf32>
    %34 = vector.shape_cast %33 : vector<1x1x32xf32> to vector<1x32xf32>
    %35 = vector.shape_cast %32 : vector<1x32xf32> to vector<1x1x32xf32>
    tpu.vector_store %arg4[%c0_14, %c0_15, %c0_16], %35 {strides = array<i32>} : memref<1x1x32xf32, #tpu.memory_space<vmem>>, vector<1x1x32xf32>,
    return
  }
  func.func @transform_0(%arg0: i32) -> (i32, i32, i32) {
    %c0_i32 = arith.constant 0 : i32
    %c0_i32_0 = arith.constant 0 : i32
    %c0_i32_1 = arith.constant 0 : i32
    return %arg0, %c0_i32, %c0_i32_0 : i32, i32, i32
  }
  func.func @transform_1(%arg0: i32) -> (i32, i32) {
    %c0_i32 = arith.constant 0 : i32
    %c0_i32_0 = arith.constant 0 : i32
    %c0_i32_1 = arith.constant 0 : i32
    return %c0_i32, %c0_i32_0 : i32, i32
  }
  func.func @transform_2(%arg0: i32) -> (i32, i32) {
    %c0_i32 = arith.constant 0 : i32
    %c0_i32_0 = arith.constant 0 : i32
    %c0_i32_1 = arith.constant 0 : i32
    return %c0_i32, %c0_i32_0 : i32, i32
  }
  func.func @transform_3(%arg0: i32) -> (i32, i32, i32) {
    %c0_i32 = arith.constant 0 : i32
    %c0_i32_0 = arith.constant 0 : i32
    %c0_i32_1 = arith.constant 0 : i32
    return %arg0, %c0_i32, %c0_i32_0 : i32, i32, i32
  }
}

module attributes {stable_mosaic.version = 11 : i64} {
  func.func @_self_mha_kernel(%arg0: i32, %arg1: memref<6x8x32xf32, #tpu.memory_space<vmem>>, %arg2: memref<32x96xf32, #tpu.memory_space<vmem>>, %arg3: memref<1x96xf32, #tpu.memory_space<vmem>>, %arg4: memref<32x32xf32, #tpu.memory_space<vmem>>, %arg5: memref<1x32xf32, #tpu.memory_space<vmem>>, %arg6: memref<6x8x32xf32, #tpu.memory_space<vmem>>) attributes {dimension_semantics = [#tpu.dimension_semantics<arbitrary>], iteration_bounds = array<i64: 1>, scalar_prefetch = 0 : i64, scratch_operands = 0 : i64, tpu.core_type = #tpu.core_type<tc>, window_params = [{pipeline_mode = #tpu.pipeline_mode<synchronous>, transform_indices = @transform_0, window_bounds = array<i64: 6, 8, 32>}, {pipeline_mode = #tpu.pipeline_mode<synchronous>, transform_indices = @transform_1, window_bounds = array<i64: 32, 96>}, {pipeline_mode = #tpu.pipeline_mode<synchronous>, transform_indices = @transform_2, window_bounds = array<i64: 1, 96>}, {pipeline_mode = #tpu.pipeline_mode<synchronous>, transform_indices = @transform_3, window_bounds = array<i64: 32, 32>}, {pipeline_mode = #tpu.pipeline_mode<synchronous>, transform_indices = @transform_4, window_bounds = array<i64: 1, 32>}, {pipeline_mode = #tpu.pipeline_mode<synchronous>, transform_indices = @transform_5, window_bounds = array<i64: 6, 8, 32>}]} {
    %c0 = arith.constant 0 : index
    %c0_0 = arith.constant 0 : index
    %c0_1 = arith.constant 0 : index
    %0 = vector.load %arg1[%c0, %c0_0, %c0_1] : memref<6x8x32xf32, #tpu.memory_space<vmem>>, vector<6x8x32xf32>
    %1 = vector.shape_cast %0 : vector<6x8x32xf32> to vector<48x32xf32>
    %c0_2 = arith.constant 0 : index
    %c0_3 = arith.constant 0 : index
    %2 = vector.load %arg2[%c0_2, %c0_3] : memref<32x96xf32, #tpu.memory_space<vmem>>, vector<32x96xf32>
    %cst = arith.constant dense<0.000000e+00> : vector<48x96xf32>
    %3 = tpu.matmul %1, %2, %cst {dimension_numbers = #tpu.dot_dimension_numbers<[1], [0], [0], [1], [0, 0, 1, 1], [], []>} : vector<48x32xf32>, vector<32x96xf32>, vector<48x96xf32> -> vector<48x96xf32>
    %c0_4 = arith.constant 0 : index
    %c0_5 = arith.constant 0 : index
    %4 = vector.load %arg3[%c0_4, %c0_5] : memref<1x96xf32, #tpu.memory_space<vmem>>, vector<1x96xf32>
    %5 = vector.broadcast %4 : vector<1x96xf32> to vector<48x96xf32>
    %6 = arith.addf %3, %5 : vector<48x96xf32>
    %7 = vector.extract_strided_slice %6 {offsets = [0, 0], sizes = [48, 32], strides = [1, 1]} : vector<48x96xf32> to vector<48x32xf32>
    %8 = vector.shape_cast %7 : vector<48x32xf32> to vector<6x8x32xf32>
    %9 = vector.extract_strided_slice %6 {offsets = [0, 32], sizes = [48, 32], strides = [1, 1]} : vector<48x96xf32> to vector<48x32xf32>
    %10 = vector.shape_cast %9 : vector<48x32xf32> to vector<6x8x32xf32>
    %11 = vector.extract_strided_slice %6 {offsets = [0, 64], sizes = [48, 32], strides = [1, 1]} : vector<48x96xf32> to vector<48x32xf32>
    %12 = vector.shape_cast %11 : vector<48x32xf32> to vector<6x8x32xf32>
    "tpu.trace_start"() <{level = 10 : i32, message = "ntd,nsd->nts"}> : () -> ()
    %cst_6 = arith.constant dense<0.000000e+00> : vector<6x8x8xf32>
    %13 = tpu.matmul %8, %10, %cst_6 {dimension_numbers = #tpu.dot_dimension_numbers<[2], [2], [1], [1], [0, 0, 0, 1, 1, 1], [0], [0]>} : vector<6x8x32xf32>, vector<6x8x32xf32>, vector<6x8x8xf32> -> vector<6x8x8xf32>
    "tpu.trace_stop"() : () -> ()
    %cst_7 = arith.constant 0.176776692 : f32
    %14 = vector.broadcast %cst_7 : f32 to vector<6x8x8xf32>
    %15 = arith.mulf %13, %14 : vector<6x8x8xf32>
    %cst_8 = arith.constant dense<0xFF800000> : vector<6x8xf32>
    %16 = vector.multi_reduction <maximumf>, %15, %cst_8 [2] : vector<6x8x8xf32> to vector<6x8xf32>
    %17 = vector.shape_cast %16 : vector<6x8xf32> to vector<6x8x1xf32>
    %18 = vector.broadcast %17 : vector<6x8x1xf32> to vector<6x8x8xf32>
    %19 = arith.subf %15, %18 : vector<6x8x8xf32>
    %20 = math.exp %19 : vector<6x8x8xf32>
    %cst_9 = arith.constant dense<0.000000e+00> : vector<6x8xf32>
    %21 = vector.multi_reduction <add>, %20, %cst_9 [2] : vector<6x8x8xf32> to vector<6x8xf32>
    %22 = vector.shape_cast %21 : vector<6x8xf32> to vector<6x8x1xf32>
    %23 = vector.broadcast %22 : vector<6x8x1xf32> to vector<6x8x8xf32>
    %24 = arith.divf %20, %23 : vector<6x8x8xf32>
    "tpu.trace_start"() <{level = 10 : i32, message = "nts,nsd->ntd"}> : () -> ()
    %cst_10 = arith.constant dense<0.000000e+00> : vector<6x8x32xf32>
    %25 = tpu.matmul %24, %12, %cst_10 {dimension_numbers = #tpu.dot_dimension_numbers<[2], [1], [1], [2], [0, 0, 0, 1, 1, 2], [0], [0]>} : vector<6x8x8xf32>, vector<6x8x32xf32>, vector<6x8x32xf32> -> vector<6x8x32xf32>
    "tpu.trace_stop"() : () -> ()
    %26 = vector.shape_cast %25 : vector<6x8x32xf32> to vector<48x32xf32>
    %c0_11 = arith.constant 0 : index
    %c0_12 = arith.constant 0 : index
    %27 = vector.load %arg4[%c0_11, %c0_12] : memref<32x32xf32, #tpu.memory_space<vmem>>, vector<32x32xf32>
    %cst_13 = arith.constant dense<0.000000e+00> : vector<48x32xf32>
    %28 = tpu.matmul %26, %27, %cst_13 {dimension_numbers = #tpu.dot_dimension_numbers<[1], [0], [0], [1], [0, 0, 1, 1], [], []>} : vector<48x32xf32>, vector<32x32xf32>, vector<48x32xf32> -> vector<48x32xf32>
    %c0_14 = arith.constant 0 : index
    %c0_15 = arith.constant 0 : index
    %29 = vector.load %arg5[%c0_14, %c0_15] : memref<1x32xf32, #tpu.memory_space<vmem>>, vector<1x32xf32>
    %30 = vector.broadcast %29 : vector<1x32xf32> to vector<48x32xf32>
    %31 = arith.addf %28, %30 : vector<48x32xf32>
    %32 = vector.shape_cast %31 : vector<48x32xf32> to vector<6x8x32xf32>
    %c0_16 = arith.constant 0 : index
    %c0_17 = arith.constant 0 : index
    %c0_18 = arith.constant 0 : index
    %33 = vector.load %arg6[%c0_16, %c0_17, %c0_18] : memref<6x8x32xf32, #tpu.memory_space<vmem>>, vector<6x8x32xf32>
    tpu.vector_store %arg6[%c0_16, %c0_17, %c0_18], %32 {strides = array<i32>} : memref<6x8x32xf32, #tpu.memory_space<vmem>>, vector<6x8x32xf32>,
    return
  }
  func.func @transform_0(%arg0: i32) -> (i32, i32, i32) {
    %c0_i32 = arith.constant 0 : i32
    %c0_i32_0 = arith.constant 0 : i32
    %c0_i32_1 = arith.constant 0 : i32
    %c0_i32_2 = arith.constant 0 : i32
    return %c0_i32, %c0_i32_0, %c0_i32_1 : i32, i32, i32
  }
  func.func @transform_1(%arg0: i32) -> (i32, i32) {
    %c0_i32 = arith.constant 0 : i32
    %c0_i32_0 = arith.constant 0 : i32
    %c0_i32_1 = arith.constant 0 : i32
    return %c0_i32, %c0_i32_0 : i32, i32
  }
  func.func @transform_2(%arg0: i32) -> (i32, i32) {
    %c0_i32 = arith.constant 0 : i32
    %c0_i32_0 = arith.constant 0 : i32
    %c0_i32_1 = arith.constant 0 : i32
    return %c0_i32, %c0_i32_0 : i32, i32
  }
  func.func @transform_3(%arg0: i32) -> (i32, i32) {
    %c0_i32 = arith.constant 0 : i32
    %c0_i32_0 = arith.constant 0 : i32
    %c0_i32_1 = arith.constant 0 : i32
    return %c0_i32, %c0_i32_0 : i32, i32
  }
  func.func @transform_4(%arg0: i32) -> (i32, i32) {
    %c0_i32 = arith.constant 0 : i32
    %c0_i32_0 = arith.constant 0 : i32
    %c0_i32_1 = arith.constant 0 : i32
    return %c0_i32, %c0_i32_0 : i32, i32
  }
  func.func @transform_5(%arg0: i32) -> (i32, i32, i32) {
    %c0_i32 = arith.constant 0 : i32
    %c0_i32_0 = arith.constant 0 : i32
    %c0_i32_1 = arith.constant 0 : i32
    %c0_i32_2 = arith.constant 0 : i32
    return %c0_i32, %c0_i32_0, %c0_i32_1 : i32, i32, i32
  }
}

module attributes {stable_mosaic.version = 11 : i64} {
  func.func @_self_mha_kernel(%arg0: i32, %arg1: memref<2x8x32xf32, #tpu.memory_space<vmem>>, %arg2: memref<32x96xf32, #tpu.memory_space<vmem>>, %arg3: memref<1x96xf32, #tpu.memory_space<vmem>>, %arg4: memref<32x32xf32, #tpu.memory_space<vmem>>, %arg5: memref<1x32xf32, #tpu.memory_space<vmem>>, %arg6: memref<1x32xf32, #tpu.memory_space<vmem>>, %arg7: memref<1x32xf32, #tpu.memory_space<vmem>>, %arg8: memref<2x8x32xf32, #tpu.memory_space<vmem>>) attributes {dimension_semantics = [#tpu.dimension_semantics<arbitrary>], iteration_bounds = array<i64: 1>, scalar_prefetch = 0 : i64, scratch_operands = 0 : i64, tpu.core_type = #tpu.core_type<tc>, window_params = [{pipeline_mode = #tpu.pipeline_mode<synchronous>, transform_indices = @transform_0, window_bounds = array<i64: 2, 8, 32>}, {pipeline_mode = #tpu.pipeline_mode<synchronous>, transform_indices = @transform_1, window_bounds = array<i64: 32, 96>}, {pipeline_mode = #tpu.pipeline_mode<synchronous>, transform_indices = @transform_2, window_bounds = array<i64: 1, 96>}, {pipeline_mode = #tpu.pipeline_mode<synchronous>, transform_indices = @transform_3, window_bounds = array<i64: 32, 32>}, {pipeline_mode = #tpu.pipeline_mode<synchronous>, transform_indices = @transform_4, window_bounds = array<i64: 1, 32>}, {pipeline_mode = #tpu.pipeline_mode<synchronous>, transform_indices = @transform_5, window_bounds = array<i64: 1, 32>}, {pipeline_mode = #tpu.pipeline_mode<synchronous>, transform_indices = @transform_6, window_bounds = array<i64: 1, 32>}, {pipeline_mode = #tpu.pipeline_mode<synchronous>, transform_indices = @transform_7, window_bounds = array<i64: 2, 8, 32>}]} {
    %c0 = arith.constant 0 : index
    %c0_0 = arith.constant 0 : index
    %c0_1 = arith.constant 0 : index
    %0 = vector.load %arg1[%c0, %c0_0, %c0_1] : memref<2x8x32xf32, #tpu.memory_space<vmem>>, vector<2x8x32xf32>
    %1 = vector.shape_cast %0 : vector<2x8x32xf32> to vector<16x32xf32>
    %c0_2 = arith.constant 0 : index
    %c0_3 = arith.constant 0 : index
    %2 = vector.load %arg2[%c0_2, %c0_3] : memref<32x96xf32, #tpu.memory_space<vmem>>, vector<32x96xf32>
    %cst = arith.constant dense<0.000000e+00> : vector<16x96xf32>
    %3 = tpu.matmul %1, %2, %cst {dimension_numbers = #tpu.dot_dimension_numbers<[1], [0], [0], [1], [0, 0, 1, 1], [], []>} : vector<16x32xf32>, vector<32x96xf32>, vector<16x96xf32> -> vector<16x96xf32>
    %c0_4 = arith.constant 0 : index
    %c0_5 = arith.constant 0 : index
    %4 = vector.load %arg3[%c0_4, %c0_5] : memref<1x96xf32, #tpu.memory_space<vmem>>, vector<1x96xf32>
    %5 = vector.broadcast %4 : vector<1x96xf32> to vector<16x96xf32>
    %6 = arith.addf %3, %5 : vector<16x96xf32>
    %7 = vector.extract_strided_slice %6 {offsets = [0, 0], sizes = [16, 32], strides = [1, 1]} : vector<16x96xf32> to vector<16x32xf32>
    %8 = vector.shape_cast %7 : vector<16x32xf32> to vector<2x8x32xf32>
    %9 = vector.extract_strided_slice %6 {offsets = [0, 32], sizes = [16, 32], strides = [1, 1]} : vector<16x96xf32> to vector<16x32xf32>
    %10 = vector.shape_cast %9 : vector<16x32xf32> to vector<2x8x32xf32>
    %11 = vector.extract_strided_slice %6 {offsets = [0, 64], sizes = [16, 32], strides = [1, 1]} : vector<16x96xf32> to vector<16x32xf32>
    %12 = vector.shape_cast %11 : vector<16x32xf32> to vector<2x8x32xf32>
    "tpu.trace_start"() <{level = 10 : i32, message = "ntd,nsd->nts"}> : () -> ()
    %cst_6 = arith.constant dense<0.000000e+00> : vector<2x8x8xf32>
    %13 = tpu.matmul %8, %10, %cst_6 {dimension_numbers = #tpu.dot_dimension_numbers<[2], [2], [1], [1], [0, 0, 0, 1, 1, 1], [0], [0]>} : vector<2x8x32xf32>, vector<2x8x32xf32>, vector<2x8x8xf32> -> vector<2x8x8xf32>
    "tpu.trace_stop"() : () -> ()
    %cst_7 = arith.constant 0.176776692 : f32
    %14 = vector.broadcast %cst_7 : f32 to vector<2x8x8xf32>
    %15 = arith.mulf %13, %14 : vector<2x8x8xf32>
    %cst_8 = arith.constant dense<0xFF800000> : vector<2x8xf32>
    %16 = vector.multi_reduction <maximumf>, %15, %cst_8 [2] : vector<2x8x8xf32> to vector<2x8xf32>
    %17 = vector.shape_cast %16 : vector<2x8xf32> to vector<2x8x1xf32>
    %18 = vector.broadcast %17 : vector<2x8x1xf32> to vector<2x8x8xf32>
    %19 = arith.subf %15, %18 : vector<2x8x8xf32>
    %20 = math.exp %19 : vector<2x8x8xf32>
    %cst_9 = arith.constant dense<0.000000e+00> : vector<2x8xf32>
    %21 = vector.multi_reduction <add>, %20, %cst_9 [2] : vector<2x8x8xf32> to vector<2x8xf32>
    %22 = vector.shape_cast %21 : vector<2x8xf32> to vector<2x8x1xf32>
    %23 = vector.broadcast %22 : vector<2x8x1xf32> to vector<2x8x8xf32>
    %24 = arith.divf %20, %23 : vector<2x8x8xf32>
    "tpu.trace_start"() <{level = 10 : i32, message = "nts,nsd->ntd"}> : () -> ()
    %cst_10 = arith.constant dense<0.000000e+00> : vector<2x8x32xf32>
    %25 = tpu.matmul %24, %12, %cst_10 {dimension_numbers = #tpu.dot_dimension_numbers<[2], [1], [1], [2], [0, 0, 0, 1, 1, 2], [0], [0]>} : vector<2x8x8xf32>, vector<2x8x32xf32>, vector<2x8x32xf32> -> vector<2x8x32xf32>
    "tpu.trace_stop"() : () -> ()
    %26 = vector.shape_cast %25 : vector<2x8x32xf32> to vector<16x32xf32>
    %c0_11 = arith.constant 0 : index
    %c0_12 = arith.constant 0 : index
    %27 = vector.load %arg4[%c0_11, %c0_12] : memref<32x32xf32, #tpu.memory_space<vmem>>, vector<32x32xf32>
    %cst_13 = arith.constant dense<0.000000e+00> : vector<16x32xf32>
    %28 = tpu.matmul %26, %27, %cst_13 {dimension_numbers = #tpu.dot_dimension_numbers<[1], [0], [0], [1], [0, 0, 1, 1], [], []>} : vector<16x32xf32>, vector<32x32xf32>, vector<16x32xf32> -> vector<16x32xf32>
    %c0_14 = arith.constant 0 : index
    %c0_15 = arith.constant 0 : index
    %29 = vector.load %arg5[%c0_14, %c0_15] : memref<1x32xf32, #tpu.memory_space<vmem>>, vector<1x32xf32>
    %30 = vector.broadcast %29 : vector<1x32xf32> to vector<16x32xf32>
    %31 = arith.addf %28, %30 : vector<16x32xf32>
    %32 = arith.addf %1, %31 : vector<16x32xf32>
    %cst_16 = arith.constant dense<0.000000e+00> : vector<16xf32>
    %33 = vector.multi_reduction <add>, %32, %cst_16 [1] : vector<16x32xf32> to vector<16xf32>
    %34 = vector.shape_cast %33 : vector<16xf32> to vector<16x1xf32>
    %cst_17 = arith.constant 3.200000e+01 : f32
    %35 = vector.broadcast %cst_17 : f32 to vector<16x1xf32>
    %36 = arith.divf %34, %35 : vector<16x1xf32>
    %37 = vector.broadcast %36 : vector<16x1xf32> to vector<16x32xf32>
    %38 = arith.subf %32, %37 : vector<16x32xf32>
    %39 = arith.mulf %38, %38 : vector<16x32xf32>
    %cst_18 = arith.constant dense<0.000000e+00> : vector<16xf32>
    %40 = vector.multi_reduction <add>, %39, %cst_18 [1] : vector<16x32xf32> to vector<16xf32>
    %41 = vector.shape_cast %40 : vector<16xf32> to vector<16x1xf32>
    %cst_19 = arith.constant 3.200000e+01 : f32
    %42 = vector.broadcast %cst_19 : f32 to vector<16x1xf32>
    %43 = arith.divf %41, %42 : vector<16x1xf32>
    %44 = vector.broadcast %36 : vector<16x1xf32> to vector<16x32xf32>
    %45 = arith.subf %32, %44 : vector<16x32xf32>
    %cst_20 = arith.constant 9.99999974E-6 : f32
    %46 = vector.broadcast %cst_20 : f32 to vector<16x1xf32>
    %47 = arith.addf %43, %46 : vector<16x1xf32>
    %48 = math.rsqrt %47 : vector<16x1xf32>
    %49 = vector.broadcast %48 : vector<16x1xf32> to vector<16x32xf32>
    %50 = arith.mulf %45, %49 : vector<16x32xf32>
    %c0_21 = arith.constant 0 : index
    %c0_22 = arith.constant 0 : index
    %51 = vector.load %arg6[%c0_21, %c0_22] : memref<1x32xf32, #tpu.memory_space<vmem>>, vector<1x32xf32>
    %52 = vector.broadcast %51 : vector<1x32xf32> to vector<16x32xf32>
    %53 = arith.mulf %50, %52 : vector<16x32xf32>
    %c0_23 = arith.constant 0 : index
    %c0_24 = arith.constant 0 : index
    %54 = vector.load %arg7[%c0_23, %c0_24] : memref<1x32xf32, #tpu.memory_space<vmem>>, vector<1x32xf32>
    %55 = vector.broadcast %54 : vector<1x32xf32> to vector<16x32xf32>
    %56 = arith.addf %53, %55 : vector<16x32xf32>
    %57 = vector.shape_cast %56 : vector<16x32xf32> to vector<2x8x32xf32>
    %c0_25 = arith.constant 0 : index
    %c0_26 = arith.constant 0 : index
    %c0_27 = arith.constant 0 : index
    %58 = vector.load %arg8[%c0_25, %c0_26, %c0_27] : memref<2x8x32xf32, #tpu.memory_space<vmem>>, vector<2x8x32xf32>
    tpu.vector_store %arg8[%c0_25, %c0_26, %c0_27], %57 {strides = array<i32>} : memref<2x8x32xf32, #tpu.memory_space<vmem>>, vector<2x8x32xf32>,
    return
  }
  func.func @transform_0(%arg0: i32) -> (i32, i32, i32) {
    %c0_i32 = arith.constant 0 : i32
    %c0_i32_0 = arith.constant 0 : i32
    %c0_i32_1 = arith.constant 0 : i32
    %c0_i32_2 = arith.constant 0 : i32
    return %c0_i32, %c0_i32_0, %c0_i32_1 : i32, i32, i32
  }
  func.func @transform_1(%arg0: i32) -> (i32, i32) {
    %c0_i32 = arith.constant 0 : i32
    %c0_i32_0 = arith.constant 0 : i32
    %c0_i32_1 = arith.constant 0 : i32
    return %c0_i32, %c0_i32_0 : i32, i32
  }
  func.func @transform_2(%arg0: i32) -> (i32, i32) {
    %c0_i32 = arith.constant 0 : i32
    %c0_i32_0 = arith.constant 0 : i32
    %c0_i32_1 = arith.constant 0 : i32
    return %c0_i32, %c0_i32_0 : i32, i32
  }
  func.func @transform_3(%arg0: i32) -> (i32, i32) {
    %c0_i32 = arith.constant 0 : i32
    %c0_i32_0 = arith.constant 0 : i32
    %c0_i32_1 = arith.constant 0 : i32
    return %c0_i32, %c0_i32_0 : i32, i32
  }
  func.func @transform_4(%arg0: i32) -> (i32, i32) {
    %c0_i32 = arith.constant 0 : i32
    %c0_i32_0 = arith.constant 0 : i32
    %c0_i32_1 = arith.constant 0 : i32
    return %c0_i32, %c0_i32_0 : i32, i32
  }
  func.func @transform_5(%arg0: i32) -> (i32, i32) {
    %c0_i32 = arith.constant 0 : i32
    %c0_i32_0 = arith.constant 0 : i32
    %c0_i32_1 = arith.constant 0 : i32
    return %c0_i32, %c0_i32_0 : i32, i32
  }
  func.func @transform_6(%arg0: i32) -> (i32, i32) {
    %c0_i32 = arith.constant 0 : i32
    %c0_i32_0 = arith.constant 0 : i32
    %c0_i32_1 = arith.constant 0 : i32
    return %c0_i32, %c0_i32_0 : i32, i32
  }
  func.func @transform_7(%arg0: i32) -> (i32, i32, i32) {
    %c0_i32 = arith.constant 0 : i32
    %c0_i32_0 = arith.constant 0 : i32
    %c0_i32_1 = arith.constant 0 : i32
    %c0_i32_2 = arith.constant 0 : i32
    return %c0_i32, %c0_i32_0, %c0_i32_1 : i32, i32, i32
  }
}

module attributes {stable_mosaic.version = 11 : i64} {
  func.func @_cross_mha_kernel(%arg0: i32, %arg1: memref<2x8x32xf32, #tpu.memory_space<vmem>>, %arg2: memref<2x8x32xf32, #tpu.memory_space<vmem>>, %arg3: memref<32x32xf32, #tpu.memory_space<vmem>>, %arg4: memref<1x32xf32, #tpu.memory_space<vmem>>, %arg5: memref<32x64xf32, #tpu.memory_space<vmem>>, %arg6: memref<1x64xf32, #tpu.memory_space<vmem>>, %arg7: memref<32x32xf32, #tpu.memory_space<vmem>>, %arg8: memref<1x32xf32, #tpu.memory_space<vmem>>, %arg9: memref<1x32xf32, #tpu.memory_space<vmem>>, %arg10: memref<1x32xf32, #tpu.memory_space<vmem>>, %arg11: memref<2x8x32xf32, #tpu.memory_space<vmem>>) attributes {dimension_semantics = [#tpu.dimension_semantics<arbitrary>], iteration_bounds = array<i64: 1>, scalar_prefetch = 0 : i64, scratch_operands = 0 : i64, tpu.core_type = #tpu.core_type<tc>, window_params = [{pipeline_mode = #tpu.pipeline_mode<synchronous>, transform_indices = @transform_0, window_bounds = array<i64: 2, 8, 32>}, {pipeline_mode = #tpu.pipeline_mode<synchronous>, transform_indices = @transform_1, window_bounds = array<i64: 2, 8, 32>}, {pipeline_mode = #tpu.pipeline_mode<synchronous>, transform_indices = @transform_2, window_bounds = array<i64: 32, 32>}, {pipeline_mode = #tpu.pipeline_mode<synchronous>, transform_indices = @transform_3, window_bounds = array<i64: 1, 32>}, {pipeline_mode = #tpu.pipeline_mode<synchronous>, transform_indices = @transform_4, window_bounds = array<i64: 32, 64>}, {pipeline_mode = #tpu.pipeline_mode<synchronous>, transform_indices = @transform_5, window_bounds = array<i64: 1, 64>}, {pipeline_mode = #tpu.pipeline_mode<synchronous>, transform_indices = @transform_6, window_bounds = array<i64: 32, 32>}, {pipeline_mode = #tpu.pipeline_mode<synchronous>, transform_indices = @transform_7, window_bounds = array<i64: 1, 32>}, {pipeline_mode = #tpu.pipeline_mode<synchronous>, transform_indices = @transform_8, window_bounds = array<i64: 1, 32>}, {pipeline_mode = #tpu.pipeline_mode<synchronous>, transform_indices = @transform_9, window_bounds = array<i64: 1, 32>}, {pipeline_mode = #tpu.pipeline_mode<synchronous>, transform_indices = @transform_10, window_bounds = array<i64: 2, 8, 32>}]} {
    %c0 = arith.constant 0 : index
    %c0_0 = arith.constant 0 : index
    %c0_1 = arith.constant 0 : index
    %0 = vector.load %arg1[%c0, %c0_0, %c0_1] : memref<2x8x32xf32, #tpu.memory_space<vmem>>, vector<2x8x32xf32>
    %c0_2 = arith.constant 0 : index
    %c0_3 = arith.constant 0 : index
    %c0_4 = arith.constant 0 : index
    %1 = vector.load %arg2[%c0_2, %c0_3, %c0_4] : memref<2x8x32xf32, #tpu.memory_space<vmem>>, vector<2x8x32xf32>
    %2 = vector.shape_cast %0 : vector<2x8x32xf32> to vector<16x32xf32>
    %3 = vector.shape_cast %1 : vector<2x8x32xf32> to vector<16x32xf32>
    %c0_5 = arith.constant 0 : index
    %c0_6 = arith.constant 0 : index
    %4 = vector.load %arg3[%c0_5, %c0_6] : memref<32x32xf32, #tpu.memory_space<vmem>>, vector<32x32xf32>
    %cst = arith.constant dense<0.000000e+00> : vector<16x32xf32>
    %5 = tpu.matmul %2, %4, %cst {dimension_numbers = #tpu.dot_dimension_numbers<[1], [0], [0], [1], [0, 0, 1, 1], [], []>} : vector<16x32xf32>, vector<32x32xf32>, vector<16x32xf32> -> vector<16x32xf32>
    %c0_7 = arith.constant 0 : index
    %c0_8 = arith.constant 0 : index
    %6 = vector.load %arg4[%c0_7, %c0_8] : memref<1x32xf32, #tpu.memory_space<vmem>>, vector<1x32xf32>
    %7 = vector.broadcast %6 : vector<1x32xf32> to vector<16x32xf32>
    %8 = arith.addf %5, %7 : vector<16x32xf32>
    %9 = vector.shape_cast %8 : vector<16x32xf32> to vector<2x8x32xf32>
    %c0_9 = arith.constant 0 : index
    %c0_10 = arith.constant 0 : index
    %10 = vector.load %arg5[%c0_9, %c0_10] : memref<32x64xf32, #tpu.memory_space<vmem>>, vector<32x64xf32>
    %cst_11 = arith.constant dense<0.000000e+00> : vector<16x64xf32>
    %11 = tpu.matmul %3, %10, %cst_11 {dimension_numbers = #tpu.dot_dimension_numbers<[1], [0], [0], [1], [0, 0, 1, 1], [], []>} : vector<16x32xf32>, vector<32x64xf32>, vector<16x64xf32> -> vector<16x64xf32>
    %c0_12 = arith.constant 0 : index
    %c0_13 = arith.constant 0 : index
    %12 = vector.load %arg6[%c0_12, %c0_13] : memref<1x64xf32, #tpu.memory_space<vmem>>, vector<1x64xf32>
    %13 = vector.broadcast %12 : vector<1x64xf32> to vector<16x64xf32>
    %14 = arith.addf %11, %13 : vector<16x64xf32>
    %15 = vector.extract_strided_slice %14 {offsets = [0, 0], sizes = [16, 32], strides = [1, 1]} : vector<16x64xf32> to vector<16x32xf32>
    %16 = vector.shape_cast %15 : vector<16x32xf32> to vector<2x8x32xf32>
    %17 = vector.extract_strided_slice %14 {offsets = [0, 32], sizes = [16, 32], strides = [1, 1]} : vector<16x64xf32> to vector<16x32xf32>
    %18 = vector.shape_cast %17 : vector<16x32xf32> to vector<2x8x32xf32>
    "tpu.trace_start"() <{level = 10 : i32, message = "btd,bsd->bts"}> : () -> ()
    %cst_14 = arith.constant dense<0.000000e+00> : vector<2x8x8xf32>
    %19 = tpu.matmul %9, %16, %cst_14 {dimension_numbers = #tpu.dot_dimension_numbers<[2], [2], [1], [1], [0, 0, 0, 1, 1, 1], [0], [0]>} : vector<2x8x32xf32>, vector<2x8x32xf32>, vector<2x8x8xf32> -> vector<2x8x8xf32>
    "tpu.trace_stop"() : () -> ()
    %cst_15 = arith.constant 0.176776692 : f32
    %20 = vector.broadcast %cst_15 : f32 to vector<2x8x8xf32>
    %21 = arith.mulf %19, %20 : vector<2x8x8xf32>
    %cst_16 = arith.constant dense<0xFF800000> : vector<2x8xf32>
    %22 = vector.multi_reduction <maximumf>, %21, %cst_16 [2] : vector<2x8x8xf32> to vector<2x8xf32>
    %23 = vector.shape_cast %22 : vector<2x8xf32> to vector<2x8x1xf32>
    %24 = vector.broadcast %23 : vector<2x8x1xf32> to vector<2x8x8xf32>
    %25 = arith.subf %21, %24 : vector<2x8x8xf32>
    %26 = math.exp %25 : vector<2x8x8xf32>
    %cst_17 = arith.constant dense<0.000000e+00> : vector<2x8xf32>
    %27 = vector.multi_reduction <add>, %26, %cst_17 [2] : vector<2x8x8xf32> to vector<2x8xf32>
    %28 = vector.shape_cast %27 : vector<2x8xf32> to vector<2x8x1xf32>
    %29 = vector.broadcast %28 : vector<2x8x1xf32> to vector<2x8x8xf32>
    %30 = arith.divf %26, %29 : vector<2x8x8xf32>
    "tpu.trace_start"() <{level = 10 : i32, message = "bts,bsd->btd"}> : () -> ()
    %cst_18 = arith.constant dense<0.000000e+00> : vector<2x8x32xf32>
    %31 = tpu.matmul %30, %18, %cst_18 {dimension_numbers = #tpu.dot_dimension_numbers<[2], [1], [1], [2], [0, 0, 0, 1, 1, 2], [0], [0]>} : vector<2x8x8xf32>, vector<2x8x32xf32>, vector<2x8x32xf32> -> vector<2x8x32xf32>
    "tpu.trace_stop"() : () -> ()
    %32 = vector.shape_cast %31 : vector<2x8x32xf32> to vector<16x32xf32>
    %c0_19 = arith.constant 0 : index
    %c0_20 = arith.constant 0 : index
    %33 = vector.load %arg7[%c0_19, %c0_20] : memref<32x32xf32, #tpu.memory_space<vmem>>, vector<32x32xf32>
    %cst_21 = arith.constant dense<0.000000e+00> : vector<16x32xf32>
    %34 = tpu.matmul %32, %33, %cst_21 {dimension_numbers = #tpu.dot_dimension_numbers<[1], [0], [0], [1], [0, 0, 1, 1], [], []>} : vector<16x32xf32>, vector<32x32xf32>, vector<16x32xf32> -> vector<16x32xf32>
    %c0_22 = arith.constant 0 : index
    %c0_23 = arith.constant 0 : index
    %35 = vector.load %arg8[%c0_22, %c0_23] : memref<1x32xf32, #tpu.memory_space<vmem>>, vector<1x32xf32>
    %36 = vector.broadcast %35 : vector<1x32xf32> to vector<16x32xf32>
    %37 = arith.addf %34, %36 : vector<16x32xf32>
    %38 = arith.addf %2, %37 : vector<16x32xf32>
    %cst_24 = arith.constant dense<0.000000e+00> : vector<16xf32>
    %39 = vector.multi_reduction <add>, %38, %cst_24 [1] : vector<16x32xf32> to vector<16xf32>
    %40 = vector.shape_cast %39 : vector<16xf32> to vector<16x1xf32>
    %cst_25 = arith.constant 3.200000e+01 : f32
    %41 = vector.broadcast %cst_25 : f32 to vector<16x1xf32>
    %42 = arith.divf %40, %41 : vector<16x1xf32>
    %43 = vector.broadcast %42 : vector<16x1xf32> to vector<16x32xf32>
    %44 = arith.subf %38, %43 : vector<16x32xf32>
    %45 = arith.mulf %44, %44 : vector<16x32xf32>
    %cst_26 = arith.constant dense<0.000000e+00> : vector<16xf32>
    %46 = vector.multi_reduction <add>, %45, %cst_26 [1] : vector<16x32xf32> to vector<16xf32>
    %47 = vector.shape_cast %46 : vector<16xf32> to vector<16x1xf32>
    %cst_27 = arith.constant 3.200000e+01 : f32
    %48 = vector.broadcast %cst_27 : f32 to vector<16x1xf32>
    %49 = arith.divf %47, %48 : vector<16x1xf32>
    %50 = vector.broadcast %42 : vector<16x1xf32> to vector<16x32xf32>
    %51 = arith.subf %38, %50 : vector<16x32xf32>
    %cst_28 = arith.constant 9.99999974E-6 : f32
    %52 = vector.broadcast %cst_28 : f32 to vector<16x1xf32>
    %53 = arith.addf %49, %52 : vector<16x1xf32>
    %54 = math.rsqrt %53 : vector<16x1xf32>
    %55 = vector.broadcast %54 : vector<16x1xf32> to vector<16x32xf32>
    %56 = arith.mulf %51, %55 : vector<16x32xf32>
    %c0_29 = arith.constant 0 : index
    %c0_30 = arith.constant 0 : index
    %57 = vector.load %arg9[%c0_29, %c0_30] : memref<1x32xf32, #tpu.memory_space<vmem>>, vector<1x32xf32>
    %58 = vector.broadcast %57 : vector<1x32xf32> to vector<16x32xf32>
    %59 = arith.mulf %56, %58 : vector<16x32xf32>
    %c0_31 = arith.constant 0 : index
    %c0_32 = arith.constant 0 : index
    %60 = vector.load %arg10[%c0_31, %c0_32] : memref<1x32xf32, #tpu.memory_space<vmem>>, vector<1x32xf32>
    %61 = vector.broadcast %60 : vector<1x32xf32> to vector<16x32xf32>
    %62 = arith.addf %59, %61 : vector<16x32xf32>
    %63 = vector.shape_cast %62 : vector<16x32xf32> to vector<2x8x32xf32>
    %c0_33 = arith.constant 0 : index
    %c0_34 = arith.constant 0 : index
    %c0_35 = arith.constant 0 : index
    %64 = vector.load %arg11[%c0_33, %c0_34, %c0_35] : memref<2x8x32xf32, #tpu.memory_space<vmem>>, vector<2x8x32xf32>
    tpu.vector_store %arg11[%c0_33, %c0_34, %c0_35], %63 {strides = array<i32>} : memref<2x8x32xf32, #tpu.memory_space<vmem>>, vector<2x8x32xf32>,
    return
  }
  func.func @transform_0(%arg0: i32) -> (i32, i32, i32) {
    %c0_i32 = arith.constant 0 : i32
    %c0_i32_0 = arith.constant 0 : i32
    %c0_i32_1 = arith.constant 0 : i32
    %c0_i32_2 = arith.constant 0 : i32
    return %c0_i32, %c0_i32_0, %c0_i32_1 : i32, i32, i32
  }
  func.func @transform_1(%arg0: i32) -> (i32, i32, i32) {
    %c0_i32 = arith.constant 0 : i32
    %c0_i32_0 = arith.constant 0 : i32
    %c0_i32_1 = arith.constant 0 : i32
    %c0_i32_2 = arith.constant 0 : i32
    return %c0_i32, %c0_i32_0, %c0_i32_1 : i32, i32, i32
  }
  func.func @transform_2(%arg0: i32) -> (i32, i32) {
    %c0_i32 = arith.constant 0 : i32
    %c0_i32_0 = arith.constant 0 : i32
    %c0_i32_1 = arith.constant 0 : i32
    return %c0_i32, %c0_i32_0 : i32, i32
  }
  func.func @transform_3(%arg0: i32) -> (i32, i32) {
    %c0_i32 = arith.constant 0 : i32
    %c0_i32_0 = arith.constant 0 : i32
    %c0_i32_1 = arith.constant 0 : i32
    return %c0_i32, %c0_i32_0 : i32, i32
  }
  func.func @transform_4(%arg0: i32) -> (i32, i32) {
    %c0_i32 = arith.constant 0 : i32
    %c0_i32_0 = arith.constant 0 : i32
    %c0_i32_1 = arith.constant 0 : i32
    return %c0_i32, %c0_i32_0 : i32, i32
  }
  func.func @transform_5(%arg0: i32) -> (i32, i32) {
    %c0_i32 = arith.constant 0 : i32
    %c0_i32_0 = arith.constant 0 : i32
    %c0_i32_1 = arith.constant 0 : i32
    return %c0_i32, %c0_i32_0 : i32, i32
  }
  func.func @transform_6(%arg0: i32) -> (i32, i32) {
    %c0_i32 = arith.constant 0 : i32
    %c0_i32_0 = arith.constant 0 : i32
    %c0_i32_1 = arith.constant 0 : i32
    return %c0_i32, %c0_i32_0 : i32, i32
  }
  func.func @transform_7(%arg0: i32) -> (i32, i32) {
    %c0_i32 = arith.constant 0 : i32
    %c0_i32_0 = arith.constant 0 : i32
    %c0_i32_1 = arith.constant 0 : i32
    return %c0_i32, %c0_i32_0 : i32, i32
  }
  func.func @transform_8(%arg0: i32) -> (i32, i32) {
    %c0_i32 = arith.constant 0 : i32
    %c0_i32_0 = arith.constant 0 : i32
    %c0_i32_1 = arith.constant 0 : i32
    return %c0_i32, %c0_i32_0 : i32, i32
  }
  func.func @transform_9(%arg0: i32) -> (i32, i32) {
    %c0_i32 = arith.constant 0 : i32
    %c0_i32_0 = arith.constant 0 : i32
    %c0_i32_1 = arith.constant 0 : i32
    return %c0_i32, %c0_i32_0 : i32, i32
  }
  func.func @transform_10(%arg0: i32) -> (i32, i32, i32) {
    %c0_i32 = arith.constant 0 : i32
    %c0_i32_0 = arith.constant 0 : i32
    %c0_i32_1 = arith.constant 0 : i32
    %c0_i32_2 = arith.constant 0 : i32
    return %c0_i32, %c0_i32_0, %c0_i32_1 : i32, i32, i32
  }
}

module attributes {stable_mosaic.version = 11 : i64} {
  func.func @_ffn_kernel(%arg0: i32, %arg1: memref<16x32xf32, #tpu.memory_space<vmem>>, %arg2: memref<32x64xf32, #tpu.memory_space<vmem>>, %arg3: memref<1x64xf32, #tpu.memory_space<vmem>>, %arg4: memref<64x32xf32, #tpu.memory_space<vmem>>, %arg5: memref<1x32xf32, #tpu.memory_space<vmem>>, %arg6: memref<1x32xf32, #tpu.memory_space<vmem>>, %arg7: memref<1x32xf32, #tpu.memory_space<vmem>>, %arg8: memref<16x32xf32, #tpu.memory_space<vmem>>) attributes {dimension_semantics = [#tpu.dimension_semantics<arbitrary>], iteration_bounds = array<i64: 1>, scalar_prefetch = 0 : i64, scratch_operands = 0 : i64, tpu.core_type = #tpu.core_type<tc>, window_params = [{pipeline_mode = #tpu.pipeline_mode<synchronous>, transform_indices = @transform_0, window_bounds = array<i64: 16, 32>}, {pipeline_mode = #tpu.pipeline_mode<synchronous>, transform_indices = @transform_1, window_bounds = array<i64: 32, 64>}, {pipeline_mode = #tpu.pipeline_mode<synchronous>, transform_indices = @transform_2, window_bounds = array<i64: 1, 64>}, {pipeline_mode = #tpu.pipeline_mode<synchronous>, transform_indices = @transform_3, window_bounds = array<i64: 64, 32>}, {pipeline_mode = #tpu.pipeline_mode<synchronous>, transform_indices = @transform_4, window_bounds = array<i64: 1, 32>}, {pipeline_mode = #tpu.pipeline_mode<synchronous>, transform_indices = @transform_5, window_bounds = array<i64: 1, 32>}, {pipeline_mode = #tpu.pipeline_mode<synchronous>, transform_indices = @transform_6, window_bounds = array<i64: 1, 32>}, {pipeline_mode = #tpu.pipeline_mode<synchronous>, transform_indices = @transform_7, window_bounds = array<i64: 16, 32>}]} {
    %c0 = arith.constant 0 : index
    %c0_0 = arith.constant 0 : index
    %0 = vector.load %arg1[%c0, %c0_0] : memref<16x32xf32, #tpu.memory_space<vmem>>, vector<16x32xf32>
    %c0_1 = arith.constant 0 : index
    %c0_2 = arith.constant 0 : index
    %1 = vector.load %arg2[%c0_1, %c0_2] : memref<32x64xf32, #tpu.memory_space<vmem>>, vector<32x64xf32>
    %cst = arith.constant dense<0.000000e+00> : vector<16x64xf32>
    %2 = tpu.matmul %0, %1, %cst {dimension_numbers = #tpu.dot_dimension_numbers<[1], [0], [0], [1], [0, 0, 1, 1], [], []>} : vector<16x32xf32>, vector<32x64xf32>, vector<16x64xf32> -> vector<16x64xf32>
    %c0_3 = arith.constant 0 : index
    %c0_4 = arith.constant 0 : index
    %3 = vector.load %arg3[%c0_3, %c0_4] : memref<1x64xf32, #tpu.memory_space<vmem>>, vector<1x64xf32>
    %4 = vector.broadcast %3 : vector<1x64xf32> to vector<16x64xf32>
    %5 = arith.addf %2, %4 : vector<16x64xf32>
    %cst_5 = arith.constant 0.000000e+00 : f32
    %6 = vector.broadcast %cst_5 : f32 to vector<16x64xf32>
    %7 = arith.maximumf %5, %6 : vector<16x64xf32>
    %c0_6 = arith.constant 0 : index
    %c0_7 = arith.constant 0 : index
    %8 = vector.load %arg4[%c0_6, %c0_7] : memref<64x32xf32, #tpu.memory_space<vmem>>, vector<64x32xf32>
    %cst_8 = arith.constant dense<0.000000e+00> : vector<16x32xf32>
    %9 = tpu.matmul %7, %8, %cst_8 {dimension_numbers = #tpu.dot_dimension_numbers<[1], [0], [0], [1], [0, 0, 1, 1], [], []>} : vector<16x64xf32>, vector<64x32xf32>, vector<16x32xf32> -> vector<16x32xf32>
    %c0_9 = arith.constant 0 : index
    %c0_10 = arith.constant 0 : index
    %10 = vector.load %arg5[%c0_9, %c0_10] : memref<1x32xf32, #tpu.memory_space<vmem>>, vector<1x32xf32>
    %11 = vector.broadcast %10 : vector<1x32xf32> to vector<16x32xf32>
    %12 = arith.addf %9, %11 : vector<16x32xf32>
    %13 = arith.addf %0, %12 : vector<16x32xf32>
    %cst_11 = arith.constant dense<0.000000e+00> : vector<16xf32>
    %14 = vector.multi_reduction <add>, %13, %cst_11 [1] : vector<16x32xf32> to vector<16xf32>
    %15 = vector.shape_cast %14 : vector<16xf32> to vector<16x1xf32>
    %cst_12 = arith.constant 3.200000e+01 : f32
    %16 = vector.broadcast %cst_12 : f32 to vector<16x1xf32>
    %17 = arith.divf %15, %16 : vector<16x1xf32>
    %18 = vector.broadcast %17 : vector<16x1xf32> to vector<16x32xf32>
    %19 = arith.subf %13, %18 : vector<16x32xf32>
    %20 = arith.mulf %19, %19 : vector<16x32xf32>
    %cst_13 = arith.constant dense<0.000000e+00> : vector<16xf32>
    %21 = vector.multi_reduction <add>, %20, %cst_13 [1] : vector<16x32xf32> to vector<16xf32>
    %22 = vector.shape_cast %21 : vector<16xf32> to vector<16x1xf32>
    %cst_14 = arith.constant 3.200000e+01 : f32
    %23 = vector.broadcast %cst_14 : f32 to vector<16x1xf32>
    %24 = arith.divf %22, %23 : vector<16x1xf32>
    %25 = vector.broadcast %17 : vector<16x1xf32> to vector<16x32xf32>
    %26 = arith.subf %13, %25 : vector<16x32xf32>
    %cst_15 = arith.constant 9.99999974E-6 : f32
    %27 = vector.broadcast %cst_15 : f32 to vector<16x1xf32>
    %28 = arith.addf %24, %27 : vector<16x1xf32>
    %29 = math.rsqrt %28 : vector<16x1xf32>
    %30 = vector.broadcast %29 : vector<16x1xf32> to vector<16x32xf32>
    %31 = arith.mulf %26, %30 : vector<16x32xf32>
    %c0_16 = arith.constant 0 : index
    %c0_17 = arith.constant 0 : index
    %32 = vector.load %arg6[%c0_16, %c0_17] : memref<1x32xf32, #tpu.memory_space<vmem>>, vector<1x32xf32>
    %33 = vector.broadcast %32 : vector<1x32xf32> to vector<16x32xf32>
    %34 = arith.mulf %31, %33 : vector<16x32xf32>
    %c0_18 = arith.constant 0 : index
    %c0_19 = arith.constant 0 : index
    %35 = vector.load %arg7[%c0_18, %c0_19] : memref<1x32xf32, #tpu.memory_space<vmem>>, vector<1x32xf32>
    %36 = vector.broadcast %35 : vector<1x32xf32> to vector<16x32xf32>
    %37 = arith.addf %34, %36 : vector<16x32xf32>
    %c0_20 = arith.constant 0 : index
    %c0_21 = arith.constant 0 : index
    %38 = vector.load %arg8[%c0_20, %c0_21] : memref<16x32xf32, #tpu.memory_space<vmem>>, vector<16x32xf32>
    tpu.vector_store %arg8[%c0_20, %c0_21], %37 {strides = array<i32>} : memref<16x32xf32, #tpu.memory_space<vmem>>, vector<16x32xf32>,
    return
  }
  func.func @transform_0(%arg0: i32) -> (i32, i32) {
    %c0_i32 = arith.constant 0 : i32
    %c0_i32_0 = arith.constant 0 : i32
    %c0_i32_1 = arith.constant 0 : i32
    return %c0_i32, %c0_i32_0 : i32, i32
  }
  func.func @transform_1(%arg0: i32) -> (i32, i32) {
    %c0_i32 = arith.constant 0 : i32
    %c0_i32_0 = arith.constant 0 : i32
    %c0_i32_1 = arith.constant 0 : i32
    return %c0_i32, %c0_i32_0 : i32, i32
  }
  func.func @transform_2(%arg0: i32) -> (i32, i32) {
    %c0_i32 = arith.constant 0 : i32
    %c0_i32_0 = arith.constant 0 : i32
    %c0_i32_1 = arith.constant 0 : i32
    return %c0_i32, %c0_i32_0 : i32, i32
  }
  func.func @transform_3(%arg0: i32) -> (i32, i32) {
    %c0_i32 = arith.constant 0 : i32
    %c0_i32_0 = arith.constant 0 : i32
    %c0_i32_1 = arith.constant 0 : i32
    return %c0_i32, %c0_i32_0 : i32, i32
  }
  func.func @transform_4(%arg0: i32) -> (i32, i32) {
    %c0_i32 = arith.constant 0 : i32
    %c0_i32_0 = arith.constant 0 : i32
    %c0_i32_1 = arith.constant 0 : i32
    return %c0_i32, %c0_i32_0 : i32, i32
  }
  func.func @transform_5(%arg0: i32) -> (i32, i32) {
    %c0_i32 = arith.constant 0 : i32
    %c0_i32_0 = arith.constant 0 : i32
    %c0_i32_1 = arith.constant 0 : i32
    return %c0_i32, %c0_i32_0 : i32, i32
  }
  func.func @transform_6(%arg0: i32) -> (i32, i32) {
    %c0_i32 = arith.constant 0 : i32
    %c0_i32_0 = arith.constant 0 : i32
    %c0_i32_1 = arith.constant 0 : i32
    return %c0_i32, %c0_i32_0 : i32, i32
  }
  func.func @transform_7(%arg0: i32) -> (i32, i32) {
    %c0_i32 = arith.constant 0 : i32
    %c0_i32_0 = arith.constant 0 : i32
    %c0_i32_1 = arith.constant 0 : i32
    return %c0_i32, %c0_i32_0 : i32, i32
  }
}

module attributes {stable_mosaic.version = 11 : i64} {
  func.func @_ffn_kernel(%arg0: i32, %arg1: memref<16x32xf32, #tpu.memory_space<vmem>>, %arg2: memref<32x64xf32, #tpu.memory_space<vmem>>, %arg3: memref<1x64xf32, #tpu.memory_space<vmem>>, %arg4: memref<64x32xf32, #tpu.memory_space<vmem>>, %arg5: memref<1x32xf32, #tpu.memory_space<vmem>>, %arg6: memref<1x32xf32, #tpu.memory_space<vmem>>, %arg7: memref<1x32xf32, #tpu.memory_space<vmem>>, %arg8: memref<16x32xf32, #tpu.memory_space<vmem>>) attributes {dimension_semantics = [#tpu.dimension_semantics<arbitrary>], iteration_bounds = array<i64: 1>, scalar_prefetch = 0 : i64, scratch_operands = 0 : i64, tpu.core_type = #tpu.core_type<tc>, window_params = [{pipeline_mode = #tpu.pipeline_mode<synchronous>, transform_indices = @transform_0, window_bounds = array<i64: 16, 32>}, {pipeline_mode = #tpu.pipeline_mode<synchronous>, transform_indices = @transform_1, window_bounds = array<i64: 32, 64>}, {pipeline_mode = #tpu.pipeline_mode<synchronous>, transform_indices = @transform_2, window_bounds = array<i64: 1, 64>}, {pipeline_mode = #tpu.pipeline_mode<synchronous>, transform_indices = @transform_3, window_bounds = array<i64: 64, 32>}, {pipeline_mode = #tpu.pipeline_mode<synchronous>, transform_indices = @transform_4, window_bounds = array<i64: 1, 32>}, {pipeline_mode = #tpu.pipeline_mode<synchronous>, transform_indices = @transform_5, window_bounds = array<i64: 1, 32>}, {pipeline_mode = #tpu.pipeline_mode<synchronous>, transform_indices = @transform_6, window_bounds = array<i64: 1, 32>}, {pipeline_mode = #tpu.pipeline_mode<synchronous>, transform_indices = @transform_7, window_bounds = array<i64: 16, 32>}]} {
    %c0 = arith.constant 0 : index
    %c0_0 = arith.constant 0 : index
    %0 = vector.load %arg1[%c0, %c0_0] : memref<16x32xf32, #tpu.memory_space<vmem>>, vector<16x32xf32>
    %c0_1 = arith.constant 0 : index
    %c0_2 = arith.constant 0 : index
    %1 = vector.load %arg2[%c0_1, %c0_2] : memref<32x64xf32, #tpu.memory_space<vmem>>, vector<32x64xf32>
    %cst = arith.constant dense<0.000000e+00> : vector<16x64xf32>
    %2 = tpu.matmul %0, %1, %cst {dimension_numbers = #tpu.dot_dimension_numbers<[1], [0], [0], [1], [0, 0, 1, 1], [], []>} : vector<16x32xf32>, vector<32x64xf32>, vector<16x64xf32> -> vector<16x64xf32>
    %c0_3 = arith.constant 0 : index
    %c0_4 = arith.constant 0 : index
    %3 = vector.load %arg3[%c0_3, %c0_4] : memref<1x64xf32, #tpu.memory_space<vmem>>, vector<1x64xf32>
    %4 = vector.broadcast %3 : vector<1x64xf32> to vector<16x64xf32>
    %5 = arith.addf %2, %4 : vector<16x64xf32>
    %cst_5 = arith.constant 0.000000e+00 : f32
    %6 = vector.broadcast %cst_5 : f32 to vector<16x64xf32>
    %7 = arith.maximumf %5, %6 : vector<16x64xf32>
    %c0_6 = arith.constant 0 : index
    %c0_7 = arith.constant 0 : index
    %8 = vector.load %arg4[%c0_6, %c0_7] : memref<64x32xf32, #tpu.memory_space<vmem>>, vector<64x32xf32>
    %cst_8 = arith.constant dense<0.000000e+00> : vector<16x32xf32>
    %9 = tpu.matmul %7, %8, %cst_8 {dimension_numbers = #tpu.dot_dimension_numbers<[1], [0], [0], [1], [0, 0, 1, 1], [], []>} : vector<16x64xf32>, vector<64x32xf32>, vector<16x32xf32> -> vector<16x32xf32>
    %c0_9 = arith.constant 0 : index
    %c0_10 = arith.constant 0 : index
    %10 = vector.load %arg5[%c0_9, %c0_10] : memref<1x32xf32, #tpu.memory_space<vmem>>, vector<1x32xf32>
    %11 = vector.broadcast %10 : vector<1x32xf32> to vector<16x32xf32>
    %12 = arith.addf %9, %11 : vector<16x32xf32>
    %13 = arith.addf %0, %12 : vector<16x32xf32>
    %cst_11 = arith.constant dense<0.000000e+00> : vector<16xf32>
    %14 = vector.multi_reduction <add>, %13, %cst_11 [1] : vector<16x32xf32> to vector<16xf32>
    %15 = vector.shape_cast %14 : vector<16xf32> to vector<16x1xf32>
    %cst_12 = arith.constant 3.200000e+01 : f32
    %16 = vector.broadcast %cst_12 : f32 to vector<16x1xf32>
    %17 = arith.divf %15, %16 : vector<16x1xf32>
    %18 = vector.broadcast %17 : vector<16x1xf32> to vector<16x32xf32>
    %19 = arith.subf %13, %18 : vector<16x32xf32>
    %20 = arith.mulf %19, %19 : vector<16x32xf32>
    %cst_13 = arith.constant dense<0.000000e+00> : vector<16xf32>
    %21 = vector.multi_reduction <add>, %20, %cst_13 [1] : vector<16x32xf32> to vector<16xf32>
    %22 = vector.shape_cast %21 : vector<16xf32> to vector<16x1xf32>
    %cst_14 = arith.constant 3.200000e+01 : f32
    %23 = vector.broadcast %cst_14 : f32 to vector<16x1xf32>
    %24 = arith.divf %22, %23 : vector<16x1xf32>
    %25 = vector.broadcast %17 : vector<16x1xf32> to vector<16x32xf32>
    %26 = arith.subf %13, %25 : vector<16x32xf32>
    %cst_15 = arith.constant 9.99999974E-6 : f32
    %27 = vector.broadcast %cst_15 : f32 to vector<16x1xf32>
    %28 = arith.addf %24, %27 : vector<16x1xf32>
    %29 = math.rsqrt %28 : vector<16x1xf32>
    %30 = vector.broadcast %29 : vector<16x1xf32> to vector<16x32xf32>
    %31 = arith.mulf %26, %30 : vector<16x32xf32>
    %c0_16 = arith.constant 0 : index
    %c0_17 = arith.constant 0 : index
    %32 = vector.load %arg6[%c0_16, %c0_17] : memref<1x32xf32, #tpu.memory_space<vmem>>, vector<1x32xf32>
    %33 = vector.broadcast %32 : vector<1x32xf32> to vector<16x32xf32>
    %34 = arith.mulf %31, %33 : vector<16x32xf32>
    %c0_18 = arith.constant 0 : index
    %c0_19 = arith.constant 0 : index
    %35 = vector.load %arg7[%c0_18, %c0_19] : memref<1x32xf32, #tpu.memory_space<vmem>>, vector<1x32xf32>
    %36 = vector.broadcast %35 : vector<1x32xf32> to vector<16x32xf32>
    %37 = arith.addf %34, %36 : vector<16x32xf32>
    %c0_20 = arith.constant 0 : index
    %c0_21 = arith.constant 0 : index
    %38 = vector.load %arg8[%c0_20, %c0_21] : memref<16x32xf32, #tpu.memory_space<vmem>>, vector<16x32xf32>
    tpu.vector_store %arg8[%c0_20, %c0_21], %37 {strides = array<i32>} : memref<16x32xf32, #tpu.memory_space<vmem>>, vector<16x32xf32>,
    return
  }
  func.func @transform_0(%arg0: i32) -> (i32, i32) {
    %c0_i32 = arith.constant 0 : i32
    %c0_i32_0 = arith.constant 0 : i32
    %c0_i32_1 = arith.constant 0 : i32
    return %c0_i32, %c0_i32_0 : i32, i32
  }
  func.func @transform_1(%arg0: i32) -> (i32, i32) {
    %c0_i32 = arith.constant 0 : i32
    %c0_i32_0 = arith.constant 0 : i32
    %c0_i32_1 = arith.constant 0 : i32
    return %c0_i32, %c0_i32_0 : i32, i32
  }
  func.func @transform_2(%arg0: i32) -> (i32, i32) {
    %c0_i32 = arith.constant 0 : i32
    %c0_i32_0 = arith.constant 0 : i32
    %c0_i32_1 = arith.constant 0 : i32
    return %c0_i32, %c0_i32_0 : i32, i32
  }
  func.func @transform_3(%arg0: i32) -> (i32, i32) {
    %c0_i32 = arith.constant 0 : i32
    %c0_i32_0 = arith.constant 0 : i32
    %c0_i32_1 = arith.constant 0 : i32
    return %c0_i32, %c0_i32_0 : i32, i32
  }
  func.func @transform_4(%arg0: i32) -> (i32, i32) {
    %c0_i32 = arith.constant 0 : i32
    %c0_i32_0 = arith.constant 0 : i32
    %c0_i32_1 = arith.constant 0 : i32
    return %c0_i32, %c0_i32_0 : i32, i32
  }
  func.func @transform_5(%arg0: i32) -> (i32, i32) {
    %c0_i32 = arith.constant 0 : i32
    %c0_i32_0 = arith.constant 0 : i32
    %c0_i32_1 = arith.constant 0 : i32
    return %c0_i32, %c0_i32_0 : i32, i32
  }
  func.func @transform_6(%arg0: i32) -> (i32, i32) {
    %c0_i32 = arith.constant 0 : i32
    %c0_i32_0 = arith.constant 0 : i32
    %c0_i32_1 = arith.constant 0 : i32
    return %c0_i32, %c0_i32_0 : i32, i32
  }
  func.func @transform_7(%arg0: i32) -> (i32, i32) {
    %c0_i32 = arith.constant 0 : i32
    %c0_i32_0 = arith.constant 0 : i32
    %c0_i32_1 = arith.constant 0 : i32
    return %c0_i32, %c0_i32_0 : i32, i32
  }
}

</mosaic_0001>

<bundles_post_ra>
// kernel: tokenformer_decoder_forward.9
= control target key start
LH: loop header
LB: loop body
LE: loop exit
PB: predicated region body
PF: predicated region fallthrough
CT: control target
= control target key end

     0   :  { %s589_s12 = smov 0   ;;  %s633_s0 = inlined_call_operand.vmem [shape: f32[16,3,32], index: 0, kind: input, shape index: {}]   ;;  %s634_s1 = inlined_call_operand.vmem [shape: f32[32,64], index: 1, kind: input, shape index: {}]   ;;  %s635_s2 = inlined_call_operand.vmem [shape: f32[1,64], index: 2, kind: input, shape index: {}]   ;;  %s636_s3 = inlined_call_operand.vmem [shape: f32[16,1,32], index: 3, kind: output, shape index: {}]  }
   0x1 LB: > { %s487_s13 = sadd.s32 4294967295, %s563_s12   ;;  %p491_p0 = scmp.ge.s32.totalorder %s563_s12, 1  ;;  %s563_s12 = sphi %s589_s12, %s13_s12  }
   0x2   : > { %p136_p1 = scmp.lt.s32.totalorder %s563_s12, 17 }
   0x4   : > { %p137_p2 = pnand %p491_p0, %p136_p1 }
   0x5   : > { %v165_v0 = vld [vmem:[%s634_s1] sm:$0xff] (!%p137_p2)  ;;  %v166_v1 = vld [vmem:[%s634_s1 + $0x8] sm:$0xff] (!%p137_p2)  ;;  %v167_v2 = vld [vmem:[%s634_s1 + $0x10] sm:$0xff] (!%p137_p2)  ;;  %v565_v3 = vmov (!%p137_p2), 0.0|0.0   ;;  %vm566_vm0 = vmmov (!%p137_p2), 0   ;;  %v567_v6 = vmov (!%p137_p2), 0.0  }
   0x6   : > { %140 = sbr.rel (%p137_p2) target bundleno = 1278 (0x4fe), region = 32  ;;  %531 = vmatprep.subr.bf16.mxu0 (!%p137_p2), %v565_v3  ;;  %v532_v4 = vpack.c.bf16 (!%p137_p2), %v166_v1, %v165_v0  ;;  %v168_v5 = vld [vmem:[%s634_s1 + $0x18] sm:$0xff] (!%p137_p2)  ;;  %518 = vmatprep.mubr.msk.f32.mxu0 (!%p137_p2), %vm566_vm0, %v567_v6  ;;  %p157_p3 = scmp.lt.s32.totalorder (!%p137_p2), %s487_s13, 15  ;;  %vm176_vm1 = vcmask (!%p137_p2), 261120   ;;  %v493_v9 = vld [vmem:[%s635_s2] ss:$0 sm:$0xff] (!%p137_p2) }
   0x7   : > { %521 = vmatprep.subr.mxu1 (!%p137_p2), %v567_v6  ;;  %523 = vmatprep.mubr.msk.f32.mxu1 (!%p137_p2), %vm566_vm0, %v567_v6  ;;  %v535_v7 = vpack.c.bf16 (!%p137_p2), %v168_v5, %v167_v2  ;;  %s568_s28 = smov (!%p137_p2), 96   ;;  %vm328_vm2 = vcmask (!%p137_p2), 18432   ;;  %vm348_vm3 = vcmask (!%p137_p2), 23552   ;;  %vm365_vm4 = vcmask (!%p137_p2), 1042432  }
   0x8   : > { %533 = vmatpush3.bf16.msra.mxu0 (!%p137_p2), %v532_v4  ;;  %vm438_vm7 = vcmask (!%p137_p2), 253952  }
   0x9   : > { %534 = vmatprep.subr.bf16.mxu0 (!%p137_p2), %v565_v3 }
   0xc   : > { %536 = vmatpush3.bf16.msra.mxu0 (!%p137_p2), %v535_v7 }
   0xd   : > { %s638_s13 = smov (!%p157_p3, %s487_s13), 15 }
   0xe   : > { %s492_s22 = sshll.u32 %s638_s13, 2  ;;  %s163_s4 = scalar_lea.vmem %s636_s3, %s638_s13 }
   0xf   : > { %s160_s25 = scalar_lea.vmem %s633_s0, %s492_s22 }
  0x10   : > { %v164_v8 = vld [vmem:[%s160_s25] sm:$0x7] }
  0x11   : > { %519 = vmatmul.mubr.msk.f32.vlgmr.msra.gmra.mrb[0].mxu0 %vm176_vm1, %v164_v8 }
  0xe4   : > { %v246_v10 = vpop.f32.mrb[0].mxu0 }
  0xe5   : > { %v247_v11 = vadd.f32 %v493_v9, %v246_v10  ;;  %v520_v12 = vpop.f32.mrb[1].mxu0 }
  0xe7   : > { %251 = vrot.lane.b32.xlu0 %v247_v11, %s568_s28 }
 0x159   : > { %v252_v13 = vpop.permute.xlu0 %251 }
 0x15a   : > { %522 = vmatpush3.xpose.msk.msra.mxu1 %vm176_vm1, %v252_v13 }
 0x15b   : > { %526 = vmatprep.subr.mxu1 %v567_v6 }
 0x15d   : > { %524 = vmatmul.mubr.msk.f32.vlgmr.msra.gmra.mrb[0].mxu1 %vm176_vm1, %v247_v11 }
 0x15e   : > { %528 = vmatprep.mubr.msk.f32.mxu1 %vm566_vm0, %v567_v6  ;;  %527 = vmatpush3.msk.msra.mxu1 %vm365_vm4, %v164_v8 }
 0x230   : > { %v323_v14 = vpop.f32.mrb[0].mxu1 }
 0x231   : > { %v327_v15 = vmul.f32 0.17677669, %v323_v14  ;;  %v525_v16 = vpop.f32.mrb[1].mxu1 }
 0x233   : > { %v329_v17 = vsel %vm328_vm2, %v327_v15, -inf }
 0x234   : > { %330 = vmax.xlane.f32.xlu0 %v329_v17 }
 0x2c1   : > { %v331_v18 = vpop.xlane.xlu0 %330 }
 0x2c2   : > { %v332_v19 = vsub.f32 %v327_v15, %v331_v18 }
 0x2c4   : > { %v333_v20 = vmul.f32 1.442695, %v332_v19 }
 0x2c6   : > { %549 = vpow2.f32 %v333_v20 }
 0x2d0   : > { %v550_v21 = vpop.eup %549 }
 0x2d1   : > { %v335_v22 = vsel %vm328_vm2, %v550_v21, 0.0 }
 0x2d2   : > { %336 = vadd.xlane.f32.xlu1 %v335_v22 }
 0x35f   : > { %v337_v23 = vpop.xlane.xlu1 %336 }
 0x360   : > { %551 = vrcp.f32 %v337_v23 }
 0x36a   : > { %v552_v24 = vpop.eup %551 }
 0x36b   : > { %v339_v25 = vmul.f32 %v552_v24, %v550_v21 }
 0x36d   : > { %v340_v26 = vsel %vm328_vm2, %v339_v25, 0.0 }
 0x36e   : > { %v341_v27 = vrot.slane %v340_v26, 4 }
 0x370   : > { %v342_v28 = vadd.f32 %v341_v27, %v340_v26 }
 0x372   : > { %v343_v29 = vrot.slane %v342_v28, 2 }
 0x374   : > { %v344_v30 = vadd.f32 %v343_v29, %v342_v28 }
 0x376   : > { %v345_v31 = vrot.slane %v344_v30, 1 }
 0x378   : > { %v346_v32 = vadd.f32 %v345_v31, %v344_v30 }
 0x37a   : > { %v347_v33 = vmul.f32 %v346_v32, %v346_v32 }
 0x37c   : > { %v349_v34 = vsel %vm348_vm3, %v347_v33, 0.0 }
 0x37d   : > { %350 = vadd.xlane.f32.xlu1 %v349_v34 }
 0x40a   : > { %v351_v35 = vpop.xlane.xlu1 %350 }
 0x40b   : > { %553 = vrsqrt.f32 %v351_v35  ;;  %vm354_vm5 = vcmp.eq.f32.partialorder %v351_v35, inf  ;;  %v357_v38 = vand.u32 2147483648, %v351_v35  ;;  %vm356_vm6 = vcmp.eq.f32.partialorder %v351_v35, 0.0 }
 0x415   : > { %v554_v36 = vpop.eup %553 }
 0x416   : > { %v353_v37 = vmul.f32 %v554_v36, %v351_v35 }
 0x418   : > { %v355_v39 = vsel %vm354_vm5, %v351_v35, %v353_v37 }
 0x419   : > { %v358_v40 = vsel %vm356_vm6, %v357_v38, %v355_v39 }
 0x41a   : > { %v359_v41 = vmax.f32 %v358_v40, 1e-12 }
 0x41c   : > { %555 = vrcp.f32 %v359_v41 }
 0x426   : > { %v556_v42 = vpop.eup %555 }
 0x427   : > { %v361_v43 = vmul.f32 %v556_v42, %v346_v32 }
 0x429   : > { %529 = vmatmul.mubr.msk.f32.vlgmr.msra.gmra.mrb[2].mxu1 %vm348_vm3, %v361_v43 }
 0x4fc   : > { %v434_v44 = vpop.f32.mrb[2].mxu1 }
 0x4fd   : > { %439 = vst.msk [vmem:[%s163_s4] sm:$0x1] %vm438_vm7, %v434_v44  ;;  %v530_v45 = vpop.f32.mrb[3].mxu1 }
 0x4fe PF: > { %s13_s12 = sadd.s32 1, %s563_s12  }
 0x4ff   : > { %p10_p4 = scmp.ge.s32.totalorder %s13_s12, 18  }
 0x501   :  { %12 = sbr.rel (!%p10_p4) target bundleno = 1 (0x1), region = 62 }

// kernel: tokenformer_decoder_forward.8
= control target key start
LH: loop header
LB: loop body
LE: loop exit
PB: predicated region body
PF: predicated region fallthrough
CT: control target
= control target key end

     0   :  { %vm37_vm0 = vcmask 261120   ;;  %v1494_v12 = vmov 0.0   ;;  %vm1495_vm1 = vmmov 0   ;;  %vm619_vm2 = vcmask 64512   ;;  %s1714_s1 = inlined_call_operand.vmem [shape: f32[32,96], index: 1, kind: input, shape index: {}]   ;;  %s1715_s0 = inlined_call_operand.vmem [shape: f32[6,8,32], index: 0, kind: input, shape index: {}]   ;;  %s1716_s2 = inlined_call_operand.vmem [shape: f32[1,96], index: 2, kind: input, shape index: {}]   ;;  %s1717_s3 = inlined_call_operand.vmem [shape: f32[32,32], index: 3, kind: input, shape index: {}]   ;;  %s1718_s4 = inlined_call_operand.vmem [shape: f32[1,32], index: 4, kind: input, shape index: {}]   ;;  %s1719_s5 = inlined_call_operand.vmem [shape: f32[6,8,32], index: 5, kind: output, shape index: {}]  }
   0x1   :  { %v26_v0 = vld [vmem:[%s1714_s1] sm:$0xff]  ;;  %v27_v1 = vld [vmem:[%s1714_s1 + $0x8] sm:$0xff]  ;;  %v28_v2 = vld [vmem:[%s1714_s1 + $0x10] sm:$0xff] }
   0x2   :  { %v1446_v3 = vpack.c.bf16 %v27_v1, %v26_v0  ;;  %v29_v4 = vld [vmem:[%s1714_s1 + $0x18] sm:$0xff]  ;;  %v20_v5 = vld [vmem:[%s1715_s0] sm:$0xff]  ;;  %v22_v7 = vld [vmem:[%s1715_s0 + $0x10] sm:$0xff] }
   0x3   :  { %v1450_v6 = vpack.c.bf16 %v29_v4, %v28_v2  ;;  %1360 = vmatprep.mubr.msk.f32.mxu0 %vm37_vm0, %v20_v5  ;;  %1363 = vmatprep.mubr.msk.f32.mxu1 %vm37_vm0, %v22_v7  ;;  %v21_v8 = vld [vmem:[%s1715_s0 + $0x8] sm:$0xff]  ;;  %v23_v9 = vld [vmem:[%s1715_s0 + $0x18] sm:$0xff]  ;;  %v24_v10 = vld [vmem:[%s1715_s0 + $0x20] sm:$0xff] }
   0x4   :  { %1447 = vmatprep.subr.bf16.mxu0 %v1446_v3  ;;  %1462 = vmatprep.subr.bf16.mxu1 %v1446_v3  ;;  %v25_v11 = vld [vmem:[%s1715_s0 + $0x28] sm:$0xff]  ;;  %v1276_v13 = vld [vmem:[%s1716_s2] ss:$0 sm:$0xff]  ;;  %s1496_s0 = smov 96   ;;  %s1497_s2 = smov 64  }
   0x5   :  { %1449 = vmatpush3.bf16.msra.mxu0 %v1446_v3  ;;  %1464 = vmatpush3.bf16.msra.mxu1 %v1446_v3 }
   0x6   :  { %1451 = vmatprep.subr.bf16.mxu0 %v1450_v6  ;;  %1463 = vmatprep.subr.bf16.mxu1 %v1450_v6 }
   0x9   :  { %1453 = vmatpush3.bf16.msra.mxu0 %v1450_v6  ;;  %1465 = vmatpush3.bf16.msra.mxu1 %v1450_v6 }
   0xa   :  { %1369 = vmatprep.subr.mxu1 %v1494_v12  ;;  %1389 = vmatprep.subr.mxu0 %v1494_v12 }
   0xc   :  { %1361 = vmatmul.mubr.msk.f32.vlgmr.msra.gmra.mrb[0].mxu0 %vm37_vm0, %v21_v8  ;;  %1364 = vmatmul.mubr.msk.f32.vlgmr.msra.gmra.mrb[0].mxu1 %vm37_vm0, %v23_v9 }
   0xd   :  { %1366 = vmatprep.mubr.msk.f32.mxu1 %vm37_vm0, %v24_v10  ;;  %1391 = vmatprep.mubr.msk.f32.mxu0 %vm1495_vm1, %v1494_v12 }
  0x10   :  { %1367 = vmatmul.mubr.msk.f32.gmra.mrb[2].mxu1 %vm37_vm0, %v25_v11 }
  0x11   :  { %1371 = vmatprep.mubr.msk.f32.mxu1 %vm1495_vm1, %v1494_v12 }
  0xdf   :  { %v1362_v14 = vpop.f32.mrb[0].mxu0  ;;  %v1365_v15 = vpop.f32.mrb[0].mxu1 }
  0xe0   :  { %v122_v16 = vpop.f32.mrb[1].mxu0  ;;  %v132_v17 = vpop.f32.mrb[1].mxu1  ;;  %v1577_v20 = vadd.f32 %v1365_v15, %v1276_v13  ;;  %v1581_v23 = vadd.f32 %v1362_v14, %v1276_v13 }
  0xe1   :  { %v1573_v18 = vadd.f32 %v1276_v13, %v122_v16  ;;  %v1575_v19 = vadd.f32 %v1276_v13, %v132_v17 }
  0xe3   :  { %152 = vrot.lane.b32.xlu0 %v1573_v18, %s1496_s0  ;;  %306 = vrot.lane.b32.xlu1 %v1575_v19, %s1496_s0  ;;  %v1368_v21 = vpop.f32.mrb[2].mxu1 }
  0xe4   :  { %v142_v22 = vpop.f32.mrb[3].mxu1  ;;  %v1583_v24 = vadd.f32 %v1368_v21, %v1276_v13 }
  0xe5   :  { %v1586_v25 = vadd.f32 %v1276_v13, %v142_v22 }
  0xe7   :  { %229 = vrot.lane.b32.xlu0 %v1581_v23, %s1496_s0  ;;  %383 = vrot.lane.b32.xlu1 %v1577_v20, %s1496_s0 }
  0xeb   :  { %460 = vrot.lane.b32.xlu0 %v1586_v25, %s1496_s0  ;;  %537 = vrot.lane.b32.xlu1 %v1583_v24, %s1496_s0 }
 0x155   :  { %v153_v26 = vpop.permute.xlu0 %152  ;;  %v307_v27 = vpop.permute.xlu1 %306 }
 0x156   :  { %1370 = vmatpush3.xpose.msk.msra.mxu1 %vm37_vm0, %v153_v26 }
 0x157   :  { %1374 = vmatprep.subr.mxu1 %v1494_v12 }
 0x159   :  { %1372 = vmatmul.mubr.msk.f32.vlgmr.msra.gmra.mrb[4].mxu1 %vm37_vm0, %v1573_v18  ;;  %v230_v28 = vpop.permute.xlu0 %229  ;;  %v384_v30 = vpop.permute.xlu1 %383 }
 0x15a   :  { %1375 = vmatpush3.xpose.msk.msra.mxu1 %vm37_vm0, %v230_v28  ;;  %1376 = vmatprep.mubr.msk.f32.mxu1 %vm1495_vm1, %v1494_v12 }
 0x15b   :  { %1379 = vmatprep.subr.mxu1 %v1494_v12 }
 0x15d   :  { %1377 = vmatmul.mubr.msk.f32.vlgmr.msra.gmra.mrb[6].mxu1 %vm37_vm0, %v1581_v23  ;;  %v461_v29 = vpop.permute.xlu0 %460  ;;  %v538_v31 = vpop.permute.xlu1 %537 }
 0x15e   :  { %1380 = vmatpush3.xpose.msk.msra.mxu1 %vm37_vm0, %v307_v27  ;;  %1390 = vmatpush3.xpose.msk.msra.mxu0 %vm37_vm0, %v461_v29 }
 0x15f   :  { %1381 = vmatprep.mubr.msk.f32.mxu1 %vm1495_vm1, %v1494_v12  ;;  %1384 = vmatprep.subr.mxu1 %v1494_v12 }
 0x160   :  { %1399 = vmatprep.subr.mxu0 %v1494_v12 }
 0x161   :  { %1382 = vmatmul.mubr.msk.f32.vlgmr.msra.gmra.mrb[8].mxu1 %vm37_vm0, %v1575_v19  ;;  %1392 = vmatmul.mubr.msk.f32.vlgmr.msra.gmra.mrb[2].mxu0 %vm37_vm0, %v1586_v25 }
 0x162   :  { %1385 = vmatpush3.xpose.msk.msra.mxu1 %vm37_vm0, %v384_v30  ;;  %1386 = vmatprep.mubr.msk.f32.mxu1 %vm1495_vm1, %v1494_v12 }
 0x163   :  { %1394 = vmatprep.subr.mxu1 %v1494_v12  ;;  %1401 = vmatprep.mubr.msk.f32.mxu0 %vm1495_vm1, %v1494_v12 }
 0x165   :  { %1387 = vmatmul.mubr.msk.f32.vlgmr.msra.gmra.mrb[10].mxu1 %vm37_vm0, %v1577_v20 }
 0x166   :  { %1395 = vmatpush3.xpose.msk.msra.mxu1 %vm37_vm0, %v538_v31  ;;  %1396 = vmatprep.mubr.msk.f32.mxu1 %vm1495_vm1, %v1494_v12 }
 0x167   :  { %1404 = vmatprep.subr.mxu1 %v1494_v12 }
 0x169   :  { %1397 = vmatmul.mubr.msk.f32.vlgmr.msra.gmra.mrb[12].mxu1 %vm37_vm0, %v1583_v24 }
 0x16a   :  { %1406 = vmatprep.mubr.msk.f32.mxu1 %vm1495_vm1, %v1494_v12 }
 0x22c   :  { %v224_v32 = vpop.f32.mrb[4].mxu1 }
 0x22d   :  { %v613_v33 = vmul.f32 0.17677669, %v224_v32  ;;  %v1373_v34 = vpop.f32.mrb[5].mxu1 }
 0x22f   :  { %v620_v35 = vsel %vm619_vm2, %v613_v33, -inf }
 0x230   :  { %621 = vmax.xlane.f32.xlu0 %v620_v35  ;;  %v301_v36 = vpop.f32.mrb[6].mxu1 }
 0x231   :  { %v614_v37 = vmul.f32 0.17677669, %v301_v36  ;;  %v1378_v38 = vpop.f32.mrb[7].mxu1 }
 0x232   :  { %v1143_v38 = vld [vmem:[%s1717_s3 + $0x8] sm:$0xff] }
 0x233   :  { %v623_v39 = vsel %vm619_vm2, %v614_v37, -inf }
 0x234   :  { %624 = vmax.xlane.f32.xlu1 %v623_v39  ;;  %v378_v40 = vpop.f32.mrb[8].mxu1  ;;  %v532_v41 = vpop.f32.mrb[2].mxu0 }
 0x235   :  { %v615_v42 = vmul.f32 0.17677669, %v378_v40  ;;  %v617_v43 = vmul.f32 0.17677669, %v532_v41  ;;  %v1383_v44 = vpop.f32.mrb[9].mxu1  ;;  %v1393_v45 = vpop.f32.mrb[3].mxu0 }
 0x237   :  { %v626_v46 = vsel %vm619_vm2, %v615_v42, -inf  ;;  %v632_v47 = vsel %vm619_vm2, %v617_v43, -inf }
 0x238   :  { %627 = vmax.xlane.f32.xlu0 %v626_v46  ;;  %v455_v48 = vpop.f32.mrb[10].mxu1  ;;  %633 = vmax.xlane.f32.xlu1 %v632_v47 }
 0x239   :  { %v616_v49 = vmul.f32 0.17677669, %v455_v48  ;;  %v1388_v50 = vpop.f32.mrb[11].mxu1 }
 0x23a   :  { %v1144_v50 = vld [vmem:[%s1717_s3 + $0x10] sm:$0xff] }
 0x23b   :  { %v629_v51 = vsel %vm619_vm2, %v616_v49, -inf }
 0x23c   :  { %630 = vmax.xlane.f32.xlu0 %v629_v51  ;;  %v609_v52 = vpop.f32.mrb[12].mxu1  ;;  %v1145_v51 = vld [vmem:[%s1717_s3 + $0x18] sm:$0xff] }
 0x23d   :  { %v618_v53 = vmul.f32 0.17677669, %v609_v52  ;;  %v1398_v54 = vpop.f32.mrb[13].mxu1  ;;  %v1458_v52 = vpack.c.bf16 %v1145_v51, %v1144_v50 }
 0x23f   :  { %v635_v55 = vsel %vm619_vm2, %v618_v53, -inf }
 0x240   :  { %636 = vmax.xlane.f32.xlu0 %v635_v55 }
 0x249   :  { %686 = vrot.lane.b32.xlu1 %v1573_v18, %s1497_s2 }
 0x24d   :  { %838 = vrot.lane.b32.xlu1 %v1575_v19, %s1497_s2 }
 0x251   :  { %914 = vrot.lane.b32.xlu1 %v1577_v20, %s1497_s2 }
 0x256   :  { %762 = vrot.lane.b32.xlu0 %v1581_v23, %s1497_s2 }
 0x2bd   :  { %v622_v56 = vpop.xlane.xlu0 %621 }
 0x2be   :  { %v638_v57 = vsub.f32 %v613_v33, %v622_v56 }
 0x2c0   :  { %v644_v58 = vmul.f32 1.442695, %v638_v57 }
 0x2c1   :  { %v625_v59 = vpop.xlane.xlu1 %624 }
 0x2c2   :  { %1470 = vpow2.f32 %v644_v58  ;;  %v639_v60 = vsub.f32 %v614_v37, %v625_v59  ;;  %v1142_v37 = vld [vmem:[%s1717_s3] sm:$0xff] }
 0x2c3   :  { %v1454_v44 = vpack.c.bf16 %v1143_v38, %v1142_v37 }
 0x2c4   :  { %v646_v61 = vmul.f32 1.442695, %v639_v60 }
 0x2c5   :  { %v634_v62 = vpop.xlane.xlu1 %633  ;;  %v628_v63 = vpop.xlane.xlu0 %627 }
 0x2c6   :  { %1472 = vpow2.f32 %v646_v61  ;;  %v642_v0 = vsub.f32 %v617_v43, %v634_v62  ;;  %v640_v1 = vsub.f32 %v615_v42, %v628_v63 }
 0x2c8   :  { %v652_v2 = vmul.f32 1.442695, %v642_v0  ;;  %v648_v3 = vmul.f32 1.442695, %v640_v1  ;;  %v1301_v0 = vld [vmem:[%s1718_s4] ss:$0 sm:$0xff] }
 0x2c9   :  { %v687_v4 = vpop.permute.xlu1 %686  ;;  %v631_v5 = vpop.xlane.xlu0 %630 }
 0x2ca   :  { %1474 = vpow2.f32 %v652_v2  ;;  %v641_v6 = vsub.f32 %v616_v49, %v631_v5  ;;  %1400 = vmatpush3.msra.mxu0 %v687_v4 }
 0x2cb   :  { %1409 = vmatprep.subr.mxu0 %v1494_v12  ;;  %1476 = vpow2.f32 %v648_v3 }
 0x2cc   :  { %v1471_v7 = vpop.eup %1470  ;;  %v650_v8 = vmul.f32 1.442695, %v641_v6 }
 0x2cd   :  { %v637_v9 = vpop.xlane.xlu0 %636  ;;  %v656_v10 = vsel %vm619_vm2, %v1471_v7, 0.0  ;;  %v839_v27 = vpop.permute.xlu1 %838 }
 0x2ce   :  { %1478 = vpow2.f32 %v650_v8  ;;  %v643_v11 = vsub.f32 %v618_v53, %v637_v9  ;;  %657 = vadd.xlane.f32.xlu1 %v656_v10 }
 0x2d0   :  { %v1473_v13 = vpop.eup %1472  ;;  %v654_v14 = vmul.f32 1.442695, %v643_v11 }
 0x2d1   :  { %v763_v15 = vpop.permute.xlu0 %762  ;;  %v659_v16 = vsel %vm619_vm2, %v1473_v13, 0.0  ;;  %v915_v28 = vpop.permute.xlu1 %914 }
 0x2d2   :  { %1480 = vpow2.f32 %v654_v14  ;;  %660 = vadd.xlane.f32.xlu0 %v659_v16  ;;  %1405 = vmatpush3.msra.mxu1 %v763_v15 }
 0x2d3   :  { %1414 = vmatprep.subr.mxu1 %v1494_v12 }
 0x2d4   :  { %v1475_v17 = vpop.eup %1474 }
 0x2d5   :  { %v668_v18 = vsel %vm619_vm2, %v1475_v17, 0.0  ;;  %v1477_v19 = vpop.eup %1476 }
 0x2d6   :  { %669 = vadd.xlane.f32.xlu1 %v668_v18  ;;  %v662_v21 = vsel %vm619_vm2, %v1477_v19, 0.0 }
 0x2d8   :  { %v1479_v20 = vpop.eup %1478 }
 0x2d9   :  { %v665_v22 = vsel %vm619_vm2, %v1479_v20, 0.0 }
 0x2da   :  { %663 = vadd.xlane.f32.xlu1 %v662_v21  ;;  %666 = vadd.xlane.f32.xlu0 %v665_v22 }
 0x2dc   :  { %v1481_v23 = vpop.eup %1480 }
 0x2dd   :  { %v671_v26 = vsel %vm619_vm2, %v1481_v23, 0.0 }
 0x2de   :  { %672 = vadd.xlane.f32.xlu0 %v671_v26 }
 0x2eb   :  { %1066 = vrot.lane.b32.xlu1 %v1583_v24, %s1497_s2 }
 0x2f4   :  { %990 = vrot.lane.b32.xlu0 %v1586_v25, %s1497_s2 }
 0x35b   :  { %v658_v29 = vpop.xlane.xlu1 %657 }
 0x35c   :  { %1482 = vrcp.f32 %v658_v29 }
 0x35f   :  { %v661_v30 = vpop.xlane.xlu0 %660 }
 0x360   :  { %1484 = vrcp.f32 %v661_v30 }
 0x363   :  { %v670_v31 = vpop.xlane.xlu1 %669 }
 0x366   :  { %v1483_v32 = vpop.eup %1482 }
 0x367   :  { %v675_v33 = vmul.f32 %v1483_v32, %v1471_v7  ;;  %v664_v34 = vpop.xlane.xlu1 %663  ;;  %v667_v35 = vpop.xlane.xlu0 %666 }
 0x368   :  { %1486 = vrcp.f32 %v664_v34 }
 0x369   :  { %1488 = vrcp.f32 %v667_v35  ;;  %1402 = vmatmul.mubr.msk.f32.vlgmr.msra.gmra.mrb[4].mxu0 %vm619_vm2, %v675_v33 }
 0x36a   :  { %v1485_v36 = vpop.eup %1484  ;;  %1490 = vrcp.f32 %v670_v31  ;;  %1410 = vmatpush3.msra.mxu0 %v839_v27  ;;  %1411 = vmatprep.mubr.msk.f32.mxu0 %vm1495_vm1, %v1494_v12 }
 0x36b   :  { %v677_v24 = vmul.f32 %v1485_v36, %v1473_v13  ;;  %v673_v25 = vpop.xlane.xlu0 %672  ;;  %1419 = vmatprep.subr.mxu0 %v1494_v12  ;;  %v1067_v47 = vpop.permute.xlu1 %1066 }
 0x36c   :  { %1492 = vrcp.f32 %v673_v25 }
 0x36d   :  { %1407 = vmatmul.mubr.msk.f32.vlgmr.msra.gmra.mrb[14].mxu1 %vm619_vm2, %v677_v24 }
 0x36e   :  { %1415 = vmatpush3.msra.mxu1 %v915_v28  ;;  %1416 = vmatprep.mubr.msk.f32.mxu1 %vm1495_vm1, %v1494_v12 }
 0x36f   :  { %1424 = vmatprep.subr.mxu1 %v1494_v12  ;;  %v991_v45 = vpop.permute.xlu0 %990 }
 0x372   :  { %v1487_v39 = vpop.eup %1486 }
 0x373   :  { %v1489_v40 = vpop.eup %1488  ;;  %v679_v41 = vmul.f32 %v1487_v39, %v1477_v19 }
 0x374   :  { %v1491_v42 = vpop.eup %1490  ;;  %v681_v43 = vmul.f32 %v1489_v40, %v1479_v20 }
 0x375   :  { %1412 = vmatmul.mubr.msk.f32.vlgmr.msra.gmra.mrb[6].mxu0 %vm619_vm2, %v679_v41  ;;  %v683_v48 = vmul.f32 %v1491_v42, %v1475_v17 }
 0x376   :  { %v1493_v46 = vpop.eup %1492  ;;  %1417 = vmatmul.mubr.msk.f32.vlgmr.msra.gmra.mrb[16].mxu1 %vm619_vm2, %v681_v43  ;;  %1420 = vmatpush3.msra.mxu0 %v991_v45 }
 0x377   :  { %v685_v49 = vmul.f32 %v1493_v46, %v1481_v23  ;;  %1425 = vmatpush3.msra.mxu1 %v1067_v47  ;;  %1421 = vmatprep.mubr.msk.f32.mxu0 %vm1495_vm1, %v1494_v12 }
 0x378   :  { %1426 = vmatprep.mubr.msk.f32.mxu1 %vm1495_vm1, %v1494_v12  ;;  %1455 = vmatprep.subr.bf16.mxu0 %v1454_v44 }
 0x379   :  { %1422 = vmatmul.mubr.msk.f32.vlgmr.msra.gmra.mrb[8].mxu0 %vm619_vm2, %v683_v48 }
 0x37a   :  { %1427 = vmatmul.mubr.msk.f32.vlgmr.msra.gmra.mrb[18].mxu1 %vm619_vm2, %v685_v49  ;;  %1457 = vmatpush3.bf16.msra.mxu0 %v1454_v44 }
 0x37b   :  { %1459 = vmatprep.subr.bf16.mxu0 %v1458_v52 }
 0x37e   :  { %1461 = vmatpush3.bf16.msra.mxu0 %v1458_v52 }
 0x43c   :  { %v758_v53 = vpop.f32.mrb[4].mxu0 }
 0x43d   :  { %v1403_v54 = vpop.f32.mrb[5].mxu0  ;;  %1437 = vmatprep.mubr.msk.f32.mxu0 %vm37_vm0, %v758_v53 }
 0x440   :  { %v834_v12 = vpop.f32.mrb[14].mxu1 }
 0x441   :  { %v1408_v55 = vpop.f32.mrb[15].mxu1  ;;  %1438 = vmatmul.mubr.msk.f32.vlgmr.msra.gmra.mrb[10].mxu0 %vm37_vm0, %v834_v12 }
 0x448   :  { %v910_v56 = vpop.f32.mrb[6].mxu0 }
 0x449   :  { %v986_v57 = vpop.f32.mrb[16].mxu1  ;;  %v1413_v58 = vpop.f32.mrb[7].mxu0  ;;  %1440 = vmatprep.mubr.msk.f32.mxu0 %vm37_vm0, %v910_v56 }
 0x44a   :  { %v1418_v59 = vpop.f32.mrb[17].mxu1  ;;  %1441 = vmatmul.mubr.msk.f32.gmra.mrb[12].mxu0 %vm37_vm0, %v986_v57 }
 0x44c   :  { %v1062_v60 = vpop.f32.mrb[8].mxu0 }
 0x44d   :  { %v1138_v61 = vpop.f32.mrb[18].mxu1  ;;  %v1423_v62 = vpop.f32.mrb[9].mxu0  ;;  %1443 = vmatprep.mubr.msk.f32.mxu0 %vm37_vm0, %v1062_v60 }
 0x44e   :  { %v1428_v63 = vpop.f32.mrb[19].mxu1  ;;  %1444 = vmatmul.mubr.msk.f32.gmra.mrb[14].mxu0 %vm37_vm0, %v1138_v61 }
 0x514   :  { %v1439_v1 = vpop.f32.mrb[10].mxu0 }
 0x515   :  { %v1243_v2 = vadd.f32 %v1439_v1, %v1301_v0  ;;  %v1237_v3 = vpop.f32.mrb[11].mxu0 }
 0x516   :  { %v1238_v4 = vadd.f32 %v1301_v0, %v1237_v3 }
 0x517   :  { %1267 = vst.msk [vmem:[%s1719_s5 + $0x8] sm:$0xff] %vm37_vm0, %v1243_v2 }
 0x518   :  { %1266 = vst.msk [vmem:[%s1719_s5] sm:$0xff] %vm37_vm0, %v1238_v4 }
 0x51d   :  { %v1442_v5 = vpop.f32.mrb[12].mxu0 }
 0x51e   :  { %v1253_v6 = vadd.f32 %v1442_v5, %v1301_v0  ;;  %v1247_v7 = vpop.f32.mrb[13].mxu0 }
 0x51f   :  { %v1248_v8 = vadd.f32 %v1301_v0, %v1247_v7 }
 0x520   :  { %1269 = vst.msk [vmem:[%s1719_s5 + $0x18] sm:$0xff] %vm37_vm0, %v1253_v6 }
 0x521   :  { %1268 = vst.msk [vmem:[%s1719_s5 + $0x10] sm:$0xff] %vm37_vm0, %v1248_v8  ;;  %v1445_v9 = vpop.f32.mrb[14].mxu0 }
 0x522   :  { %v1263_v10 = vadd.f32 %v1445_v9, %v1301_v0  ;;  %v1257_v11 = vpop.f32.mrb[15].mxu0 }
 0x523   :  { %v1258_v13 = vadd.f32 %v1301_v0, %v1257_v11 }
 0x524   :  { %1271 = vst.msk [vmem:[%s1719_s5 + $0x28] sm:$0xff] %vm37_vm0, %v1263_v10 }
 0x525   :  { %1270 = vst.msk [vmem:[%s1719_s5 + $0x20] sm:$0xff] %vm37_vm0, %v1258_v13 }

// kernel: tokenformer_decoder_forward.10
= control target key start
LH: loop header
LB: loop body
LE: loop exit
PB: predicated region body
PF: predicated region fallthrough
CT: control target
= control target key end

     0   :  { %vm39_vm0 = vcmask 261120   ;;  %v705_v8 = vmov 0.0   ;;  %vm706_vm1 = vmmov 0   ;;  %s707_s14 = smov 96   ;;  %vm277_vm2 = vcmask 64512   ;;  %s837_s1 = inlined_call_operand.vmem [shape: f32[32,96], index: 1, kind: input, shape index: {}]   ;;  %s838_s0 = inlined_call_operand.vmem [shape: f32[2,8,32], index: 0, kind: input, shape index: {}]   ;;  %s839_s2 = inlined_call_operand.vmem [shape: f32[1,96], index: 2, kind: input, shape index: {}]   ;;  %s840_s3 = inlined_call_operand.vmem [shape: f32[32,32], index: 3, kind: input, shape index: {}]   ;;  %s841_s4 = inlined_call_operand.vmem [shape: f32[1,32], index: 4, kind: input, shape index: {}]   ;;  %s842_s5 = inlined_call_operand.vmem [shape: f32[1,32], index: 5, kind: input, shape index: {}]   ;;  %s843_s6 = inlined_call_operand.vmem [shape: f32[1,32], index: 6, kind: input, shape index: {}]   ;;  %s844_s7 = inlined_call_operand.vmem [shape: f32[2,8,32], index: 7, kind: output, shape index: {}]  }
   0x1   :  { %v28_v0 = vld [vmem:[%s837_s1] sm:$0xff]  ;;  %v29_v1 = vld [vmem:[%s837_s1 + $0x8] sm:$0xff]  ;;  %v30_v2 = vld [vmem:[%s837_s1 + $0x10] sm:$0xff]  ;;  %642 = vmatprep.subr.mxu1 %v705_v8  ;;  %644 = vmatprep.mubr.msk.f32.mxu1 %vm706_vm1, %v705_v8 }
   0x2   :  { %v673_v3 = vpack.c.bf16 %v29_v1, %v28_v0  ;;  %v31_v4 = vld [vmem:[%s837_s1 + $0x18] sm:$0xff]  ;;  %v764_v5 = vld [vmem:[%s838_s0] sm:$0xff]  ;;  %v771_v7 = vld [vmem:[%s838_s0 + $0x8] sm:$0xff]  ;;  %s708_s0 = smov 64  }
   0x3   :  { %v677_v6 = vpack.c.bf16 %v31_v4, %v30_v2  ;;  %639 = vmatprep.mubr.msk.f32.mxu0 %vm39_vm0, %v764_v5  ;;  %v597_v9 = vld [vmem:[%s839_s2] ss:$0 sm:$0xff]  ;;  %v453_v36 = vld [vmem:[%s840_s3 + $0x8] sm:$0xff]  ;;  %v454_v45 = vld [vmem:[%s840_s3 + $0x10] sm:$0xff] }
   0x4   :  { %674 = vmatprep.subr.bf16.mxu0 %v673_v3  ;;  %v452_v35 = vld [vmem:[%s840_s3] sm:$0xff]  ;;  %v455_v46 = vld [vmem:[%s840_s3 + $0x18] sm:$0xff] }
   0x5   :  { %676 = vmatpush3.bf16.msra.mxu0 %v673_v3  ;;  %v681_v37 = vpack.c.bf16 %v453_v36, %v452_v35  ;;  %v685_v47 = vpack.c.bf16 %v455_v46, %v454_v45  ;;  %v606_v52 = vld [vmem:[%s841_s4] ss:$0 sm:$0xff] }
   0x6   :  { %678 = vmatprep.subr.bf16.mxu0 %v677_v6 }
   0x9   :  { %680 = vmatpush3.bf16.msra.mxu0 %v677_v6 }
   0xa   :  { %682 = vmatprep.subr.bf16.mxu0 %v681_v37 }
   0xc   :  { %640 = vmatmul.mubr.msk.f32.vlgmr.msra.gmra.mrb[0].mxu0 %vm39_vm0, %v771_v7 }
   0xd   :  { %684 = vmatpush3.bf16.msra.mxu0 %v681_v37 }
   0xe   :  { %686 = vmatprep.subr.bf16.mxu0 %v685_v47 }
  0x11   :  { %688 = vmatpush3.bf16.msra.mxu0 %v685_v47 }
  0xdf   :  { %v641_v10 = vpop.f32.mrb[0].mxu0 }
  0xe0   :  { %v112_v11 = vpop.f32.mrb[1].mxu0  ;;  %v118_v13 = vadd.f32 %v641_v10, %v597_v9 }
  0xe1   :  { %v113_v12 = vadd.f32 %v597_v9, %v112_v11 }
  0xe3   :  { %122 = vrot.lane.b32.xlu0 %v113_v12, %s707_s14 }
  0xe7   :  { %199 = vrot.lane.b32.xlu0 %v118_v13, %s707_s14 }
 0x155   :  { %v123_v14 = vpop.permute.xlu0 %122 }
 0x156   :  { %643 = vmatpush3.xpose.msk.msra.mxu1 %vm39_vm0, %v123_v14  ;;  %v609_v14 = vld [vmem:[%s842_s5] ss:$0 sm:$0xff] }
 0x157   :  { %647 = vmatprep.subr.mxu1 %v705_v8 }
 0x159   :  { %645 = vmatmul.mubr.msk.f32.vlgmr.msra.gmra.mrb[0].mxu1 %vm39_vm0, %v113_v12  ;;  %v200_v15 = vpop.permute.xlu0 %199 }
 0x15a   :  { %648 = vmatpush3.xpose.msk.msra.mxu1 %vm39_vm0, %v200_v15  ;;  %649 = vmatprep.mubr.msk.f32.mxu1 %vm706_vm1, %v705_v8 }
 0x15b   :  { %652 = vmatprep.subr.mxu1 %v705_v8 }
 0x15d   :  { %650 = vmatmul.mubr.msk.f32.vlgmr.msra.gmra.mrb[2].mxu1 %vm39_vm0, %v118_v13 }
 0x15e   :  { %654 = vmatprep.mubr.msk.f32.mxu1 %vm706_vm1, %v705_v8 }
 0x22c   :  { %v194_v16 = vpop.f32.mrb[0].mxu1 }
 0x22d   :  { %v275_v17 = vmul.f32 0.17677669, %v194_v16  ;;  %v646_v18 = vpop.f32.mrb[1].mxu1  ;;  %v610_v16 = vld [vmem:[%s843_s6] ss:$0 sm:$0xff] }
 0x22f   :  { %v278_v19 = vsel %vm277_vm2, %v275_v17, -inf }
 0x230   :  { %279 = vmax.xlane.f32.xlu1 %v278_v19  ;;  %v271_v20 = vpop.f32.mrb[2].mxu1 }
 0x231   :  { %v276_v21 = vmul.f32 0.17677669, %v271_v20  ;;  %v651_v22 = vpop.f32.mrb[3].mxu1 }
 0x233   :  { %v281_v23 = vsel %vm277_vm2, %v276_v21, -inf }
 0x234   :  { %282 = vmax.xlane.f32.xlu1 %v281_v23 }
 0x245   :  { %300 = vrot.lane.b32.xlu1 %v113_v12, %s708_s0 }
 0x2bd   :  { %v280_v24 = vpop.xlane.xlu1 %279 }
 0x2be   :  { %v284_v25 = vsub.f32 %v275_v17, %v280_v24 }
 0x2c0   :  { %v286_v26 = vmul.f32 1.442695, %v284_v25 }
 0x2c1   :  { %v283_v27 = vpop.xlane.xlu1 %282 }
 0x2c2   :  { %693 = vpow2.f32 %v286_v26  ;;  %v285_v28 = vsub.f32 %v276_v21, %v283_v27 }
 0x2c4   :  { %v288_v29 = vmul.f32 1.442695, %v285_v28 }
 0x2c5   :  { %v301_v30 = vpop.permute.xlu1 %300 }
 0x2c6   :  { %695 = vpow2.f32 %v288_v29  ;;  %653 = vmatpush3.msra.mxu1 %v301_v30 }
 0x2c7   :  { %657 = vmatprep.subr.mxu1 %v705_v8 }
 0x2cc   :  { %v694_v31 = vpop.eup %693 }
 0x2cd   :  { %v290_v32 = vsel %vm277_vm2, %v694_v31, 0.0 }
 0x2ce   :  { %291 = vadd.xlane.f32.xlu0 %v290_v32 }
 0x2d0   :  { %v696_v33 = vpop.eup %695 }
 0x2d1   :  { %v293_v34 = vsel %vm277_vm2, %v696_v33, 0.0 }
 0x2d2   :  { %294 = vadd.xlane.f32.xlu1 %v293_v34 }
 0x2e3   :  { %376 = vrot.lane.b32.xlu1 %v118_v13, %s708_s0 }
 0x35b   :  { %v292_v38 = vpop.xlane.xlu0 %291 }
 0x35c   :  { %697 = vrcp.f32 %v292_v38 }
 0x35f   :  { %v295_v39 = vpop.xlane.xlu1 %294 }
 0x360   :  { %699 = vrcp.f32 %v295_v39 }
 0x363   :  { %v377_v42 = vpop.permute.xlu1 %376 }
 0x366   :  { %v698_v40 = vpop.eup %697 }
 0x367   :  { %v297_v41 = vmul.f32 %v698_v40, %v694_v31 }
 0x369   :  { %655 = vmatmul.mubr.msk.f32.vlgmr.msra.gmra.mrb[4].mxu1 %vm277_vm2, %v297_v41 }
 0x36a   :  { %v700_v43 = vpop.eup %699  ;;  %658 = vmatpush3.msra.mxu1 %v377_v42  ;;  %659 = vmatprep.mubr.msk.f32.mxu1 %vm706_vm1, %v705_v8 }
 0x36b   :  { %v299_v44 = vmul.f32 %v700_v43, %v696_v33 }
 0x36d   :  { %660 = vmatmul.mubr.msk.f32.vlgmr.msra.gmra.mrb[6].mxu1 %vm277_vm2, %v299_v44 }
 0x43c   :  { %v372_v48 = vpop.f32.mrb[4].mxu1 }
 0x43d   :  { %v656_v49 = vpop.f32.mrb[5].mxu1  ;;  %670 = vmatprep.mubr.msk.f32.mxu0 %vm39_vm0, %v372_v48 }
 0x440   :  { %v448_v50 = vpop.f32.mrb[6].mxu1 }
 0x441   :  { %v661_v51 = vpop.f32.mrb[7].mxu1  ;;  %671 = vmatmul.mubr.msk.f32.vlgmr.msra.gmra.mrb[2].mxu0 %vm39_vm0, %v448_v50 }
 0x514   :  { %v672_v53 = vpop.f32.mrb[2].mxu0 }
 0x515   :  { %v541_v54 = vadd.f32 %v672_v53, %v606_v52  ;;  %v535_v55 = vpop.f32.mrb[3].mxu0 }
 0x516   :  { %v536_v56 = vadd.f32 %v606_v52, %v535_v55 }
 0x517   :  { %v545_v57 = vadd.f32 %v541_v54, %v771_v7 }
 0x518   :  { %v544_v58 = vadd.f32 %v536_v56, %v764_v5 }
 0x519   :  { %v549_v59 = vsel %vm39_vm0, %v545_v57, 0.0 }
 0x51a   :  { %550 = vadd.xlane.f32.xlu0 %v549_v59  ;;  %v546_v60 = vsel %vm39_vm0, %v544_v58, 0.0 }
 0x51b   :  { %547 = vadd.xlane.f32.xlu1 %v546_v60 }
 0x5a7   :  { %v551_v61 = vpop.xlane.xlu0 %550 }
 0x5a8   :  { %v554_v62 = vmul.f32 0.03125, %v551_v61  ;;  %v548_v63 = vpop.xlane.xlu1 %547 }
 0x5a9   :  { %v553_v0 = vmul.f32 0.03125, %v548_v63 }
 0x5aa   :  { %v556_v1 = vsub.f32 %v545_v57, %v554_v62 }
 0x5ab   :  { %v555_v2 = vsub.f32 %v544_v58, %v553_v0 }
 0x5ac   :  { %v558_v6 = vmul.f32 %v556_v1, %v556_v1 }
 0x5ad   :  { %v557_v3 = vmul.f32 %v555_v2, %v555_v2 }
 0x5ae   :  { %v562_v7 = vsel %vm39_vm0, %v558_v6, 0.0 }
 0x5af   :  { %v559_v4 = vsel %vm39_vm0, %v557_v3, 0.0 }
 0x5b0   :  { %560 = vadd.xlane.f32.xlu0 %v559_v4 }
 0x5b4   :  { %563 = vadd.xlane.f32.xlu0 %v562_v7 }
 0x63d   :  { %v561_v5 = vpop.xlane.xlu0 %560 }
 0x63e   :  { %v565_v8 = vmul.f32 0.03125, %v561_v5 }
 0x640   :  { %v567_v9 = vadd.f32 1e-05, %v565_v8 }
 0x641   :  { %v564_v10 = vpop.xlane.xlu0 %563 }
 0x642   :  { %701 = vrsqrt.f32 %v567_v9  ;;  %v566_v11 = vmul.f32 0.03125, %v564_v10 }
 0x644   :  { %v568_v12 = vadd.f32 1e-05, %v566_v11 }
 0x646   :  { %703 = vrsqrt.f32 %v568_v12 }
 0x64c   :  { %v702_v13 = vpop.eup %701 }
 0x64d   :  { %v571_v15 = vmul.f32 %v702_v13, %v555_v2 }
 0x64f   :  { %v580_v17 = vmul.f32 %v609_v14, %v571_v15 }
 0x650   :  { %v704_v18 = vpop.eup %703 }
 0x651   :  { %v589_v19 = vadd.f32 %v610_v16, %v580_v17  ;;  %v572_v20 = vmul.f32 %v704_v18, %v556_v1 }
 0x653   :  { %591 = vst.msk [vmem:[%s844_s7] sm:$0xff] %vm39_vm0, %v589_v19  ;;  %v581_v21 = vmul.f32 %v609_v14, %v572_v20 }
 0x655   :  { %v590_v22 = vadd.f32 %v610_v16, %v581_v21 }
 0x657   :  { %592 = vst.msk [vmem:[%s844_s7 + $0x8] sm:$0xff] %vm39_vm0, %v590_v22 }

// kernel: tokenformer_decoder_forward.12
= control target key start
LH: loop header
LB: loop body
LE: loop exit
PB: predicated region body
PF: predicated region fallthrough
CT: control target
= control target key end

     0   :  { %vm39_vm0 = vcmask 261120   ;;  %vm138_vm1 = vcmask 523264   ;;  %s463_s1 = inlined_call_operand.vmem [shape: f32[32,64], index: 1, kind: input, shape index: {}]   ;;  %s464_s0 = inlined_call_operand.vmem [shape: f32[16,32], index: 0, kind: input, shape index: {}]   ;;  %s465_s3 = inlined_call_operand.vmem [shape: f32[64,32], index: 3, kind: input, shape index: {}]   ;;  %s466_s2 = inlined_call_operand.vmem [shape: f32[1,64], index: 2, kind: input, shape index: {}]   ;;  %s467_s4 = inlined_call_operand.vmem [shape: f32[1,32], index: 4, kind: input, shape index: {}]   ;;  %s468_s5 = inlined_call_operand.vmem [shape: f32[1,32], index: 5, kind: input, shape index: {}]   ;;  %s469_s6 = inlined_call_operand.vmem [shape: f32[1,32], index: 6, kind: input, shape index: {}]   ;;  %s470_s7 = inlined_call_operand.vmem [shape: f32[16,32], index: 7, kind: output, shape index: {}]  }
   0x1   :  { %v28_v0 = vld [vmem:[%s463_s1] sm:$0xff]  ;;  %v29_v1 = vld [vmem:[%s463_s1 + $0x8] sm:$0xff]  ;;  %v30_v2 = vld [vmem:[%s463_s1 + $0x10] sm:$0xff] }
   0x2   :  { %v327_v3 = vpack.c.bf16 %v29_v1, %v28_v0  ;;  %v31_v4 = vld [vmem:[%s463_s1 + $0x18] sm:$0xff]  ;;  %v26_v5 = vld [vmem:[%s464_s0] sm:$0xff]  ;;  %v124_v8 = vld [vmem:[%s465_s3 + $0x8] sm:$0xff] }
   0x3   :  { %v331_v6 = vpack.c.bf16 %v31_v4, %v30_v2  ;;  %305 = vmatprep.mubr.msk.f32.mxu0 %vm39_vm0, %v26_v5  ;;  %v123_v7 = vld [vmem:[%s465_s3] sm:$0xff]  ;;  %v125_v9 = vld [vmem:[%s465_s3 + $0x10] sm:$0xff]  ;;  %v126_v11 = vld [vmem:[%s465_s3 + $0x18] sm:$0xff] }
   0x4   :  { %328 = vmatprep.subr.bf16.mxu0 %v327_v3  ;;  %v335_v10 = vpack.c.bf16 %v124_v8, %v123_v7  ;;  %v339_v12 = vpack.c.bf16 %v126_v11, %v125_v9  ;;  %v127_v13 = vld [vmem:[%s465_s3 + $0x20] sm:$0xff]  ;;  %v128_v14 = vld [vmem:[%s465_s3 + $0x28] sm:$0xff]  ;;  %v129_v17 = vld [vmem:[%s465_s3 + $0x30] sm:$0xff] }
   0x5   :  { %330 = vmatpush3.bf16.msra.mxu0 %v327_v3  ;;  %v343_v15 = vpack.c.bf16 %v128_v14, %v127_v13  ;;  %v27_v16 = vld [vmem:[%s464_s0 + $0x8] sm:$0xff]  ;;  %v130_v18 = vld [vmem:[%s465_s3 + $0x38] sm:$0xff]  ;;  %v273_v20 = vld [vmem:[%s466_s2] ss:$0 sm:$0xff] }
   0x6   :  { %332 = vmatprep.subr.bf16.mxu0 %v331_v6  ;;  %336 = vmatprep.subr.bf16.mxu1 %v335_v10  ;;  %v347_v19 = vpack.c.bf16 %v130_v18, %v129_v17  ;;  %v276_v27 = vld [vmem:[%s467_s4] ss:$0 sm:$0xff] }
   0x7   :  { %338 = vmatpush3.bf16.msra.mxu1 %v335_v10  ;;  %v279_v53 = vld [vmem:[%s468_s5] ss:$0 sm:$0xff] }
   0x8   :  { %340 = vmatprep.subr.bf16.mxu1 %v339_v12  ;;  %v280_v55 = vld [vmem:[%s469_s6] ss:$0 sm:$0xff] }
   0x9   :  { %334 = vmatpush3.bf16.msra.mxu0 %v331_v6 }
   0xb   :  { %342 = vmatpush3.bf16.msra.mxu1 %v339_v12 }
   0xc   :  { %306 = vmatmul.mubr.msk.f32.vlgmr.msra.gmra.mrb[0].mxu0 %vm39_vm0, %v27_v16  ;;  %344 = vmatprep.subr.bf16.mxu1 %v343_v15 }
   0xf   :  { %346 = vmatpush3.bf16.msra.mxu1 %v343_v15 }
  0x10   :  { %348 = vmatprep.subr.bf16.mxu1 %v347_v19 }
  0x13   :  { %350 = vmatpush3.bf16.msra.mxu1 %v347_v19 }
  0xdf   :  { %v307_v21 = vpop.f32.mrb[0].mxu0 }
  0xe0   :  { %v118_v22 = vadd.f32 %v307_v21, %v273_v20  ;;  %v112_v23 = vpop.f32.mrb[1].mxu0 }
  0xe1   :  { %v113_v24 = vadd.f32 %v273_v20, %v112_v23 }
  0xe2   :  { %v122_v26 = vmax.f32 %v118_v22, 0.0 }
  0xe3   :  { %v121_v25 = vmax.f32 %v113_v24, 0.0 }
  0xe5   :  { %324 = vmatprep.mubr.msk.f32.mxu1 %vm138_vm1, %v121_v25 }
  0xe6   :  { %325 = vmatmul.mubr.msk.f32.vlgmr.msra.gmra.mrb[0].mxu1 %vm138_vm1, %v122_v26 }
 0x1b9   :  { %v326_v28 = vpop.f32.mrb[0].mxu1 }
 0x1ba   :  { %v211_v29 = vpop.f32.mrb[1].mxu1  ;;  %v217_v30 = vadd.f32 %v326_v28, %v276_v27 }
 0x1bb   :  { %v212_v31 = vadd.f32 %v276_v27, %v211_v29 }
 0x1bc   :  { %v221_v34 = vadd.f32 %v217_v30, %v27_v16 }
 0x1bd   :  { %v220_v32 = vadd.f32 %v212_v31, %v26_v5 }
 0x1be   :  { %v225_v35 = vsel %vm39_vm0, %v221_v34, 0.0 }
 0x1bf   :  { %v222_v33 = vsel %vm39_vm0, %v220_v32, 0.0 }
 0x1c0   :  { %223 = vadd.xlane.f32.xlu0 %v222_v33 }
 0x1c4   :  { %226 = vadd.xlane.f32.xlu0 %v225_v35 }
 0x24d   :  { %v224_v36 = vpop.xlane.xlu0 %223 }
 0x24e   :  { %v229_v37 = vmul.f32 0.03125, %v224_v36 }
 0x250   :  { %v231_v38 = vsub.f32 %v220_v32, %v229_v37 }
 0x251   :  { %v227_v39 = vpop.xlane.xlu0 %226 }
 0x252   :  { %v230_v40 = vmul.f32 0.03125, %v227_v39  ;;  %v233_v41 = vmul.f32 %v231_v38, %v231_v38 }
 0x254   :  { %v232_v42 = vsub.f32 %v221_v34, %v230_v40  ;;  %v235_v43 = vsel %vm39_vm0, %v233_v41, 0.0 }
 0x255   :  { %236 = vadd.xlane.f32.xlu1 %v235_v43 }
 0x256   :  { %v234_v44 = vmul.f32 %v232_v42, %v232_v42 }
 0x258   :  { %v238_v45 = vsel %vm39_vm0, %v234_v44, 0.0 }
 0x259   :  { %239 = vadd.xlane.f32.xlu1 %v238_v45 }
 0x2e2   :  { %v237_v46 = vpop.xlane.xlu1 %236 }
 0x2e3   :  { %v241_v47 = vmul.f32 0.03125, %v237_v46 }
 0x2e5   :  { %v243_v48 = vadd.f32 1e-05, %v241_v47 }
 0x2e6   :  { %v240_v49 = vpop.xlane.xlu1 %239 }
 0x2e7   :  { %351 = vrsqrt.f32 %v243_v48  ;;  %v242_v50 = vmul.f32 0.03125, %v240_v49 }
 0x2e9   :  { %v244_v51 = vadd.f32 1e-05, %v242_v50 }
 0x2eb   :  { %353 = vrsqrt.f32 %v244_v51 }
 0x2f1   :  { %v352_v52 = vpop.eup %351 }
 0x2f2   :  { %v247_v54 = vmul.f32 %v352_v52, %v231_v38 }
 0x2f4   :  { %v256_v56 = vmul.f32 %v279_v53, %v247_v54 }
 0x2f5   :  { %v354_v57 = vpop.eup %353 }
 0x2f6   :  { %v265_v58 = vadd.f32 %v280_v55, %v256_v56  ;;  %v248_v59 = vmul.f32 %v354_v57, %v232_v42 }
 0x2f8   :  { %267 = vst.msk [vmem:[%s470_s7] sm:$0xff] %vm39_vm0, %v265_v58  ;;  %v257_v60 = vmul.f32 %v279_v53, %v248_v59 }
 0x2fa   :  { %v266_v61 = vadd.f32 %v280_v55, %v257_v60 }
 0x2fc   :  { %268 = vst.msk [vmem:[%s470_s7 + $0x8] sm:$0xff] %vm39_vm0, %v266_v61 }

// kernel: tokenformer_decoder_forward.15
= control target key start
LH: loop header
LB: loop body
LE: loop exit
PB: predicated region body
PF: predicated region fallthrough
CT: control target
= control target key end

     0   :  { %vm40_vm0 = vcmask 261120   ;;  %s512_s0 = inlined_call_operand.vmem [shape: f32[16,32], index: 0, kind: input, shape index: {}]   ;;  %s513_s1 = inlined_call_operand.vmem [shape: f32[32,64], index: 1, kind: input, shape index: {}]   ;;  %s514_s2 = inlined_call_operand.vmem [shape: f32[1,64], index: 2, kind: input, shape index: {}]   ;;  %s515_s3 = inlined_call_operand.vmem [shape: f32[64,32], index: 3, kind: input, shape index: {}]   ;;  %s516_s4 = inlined_call_operand.vmem [shape: f32[1,32], index: 4, kind: input, shape index: {}]   ;;  %s517_s5 = inlined_call_operand.vmem [shape: f32[1,32], index: 5, kind: input, shape index: {}]   ;;  %s518_s6 = inlined_call_operand.vmem [shape: f32[1,32], index: 6, kind: input, shape index: {}]   ;;  %s519_s7 = inlined_call_operand.hbm [shape: f32[16,32], index: 7, kind: output, shape index: {}]  }
   0x1   :  { %v29_v0 = vld [vmem:[%s513_s1] sm:$0xff]  ;;  %v30_v1 = vld [vmem:[%s513_s1 + $0x8] sm:$0xff]  ;;  %v31_v2 = vld [vmem:[%s513_s1 + $0x10] sm:$0xff] }
   0x2   :  { %v340_v3 = vpack.c.bf16 %v30_v1, %v29_v0  ;;  %v32_v4 = vld [vmem:[%s513_s1 + $0x18] sm:$0xff]  ;;  %v27_v5 = vld [vmem:[%s512_s0] sm:$0xff]  ;;  %v125_v8 = vld [vmem:[%s515_s3 + $0x8] sm:$0xff] }
   0x3   :  { %v344_v6 = vpack.c.bf16 %v32_v4, %v31_v2  ;;  %318 = vmatprep.mubr.msk.f32.mxu0 %vm40_vm0, %v27_v5  ;;  %v124_v7 = vld [vmem:[%s515_s3] sm:$0xff]  ;;  %v126_v9 = vld [vmem:[%s515_s3 + $0x10] sm:$0xff]  ;;  %v127_v11 = vld [vmem:[%s515_s3 + $0x18] sm:$0xff] }
   0x4   :  { %341 = vmatprep.subr.bf16.mxu0 %v340_v3  ;;  %v348_v10 = vpack.c.bf16 %v125_v8, %v124_v7  ;;  %v352_v12 = vpack.c.bf16 %v127_v11, %v126_v9  ;;  %v128_v13 = vld [vmem:[%s515_s3 + $0x20] sm:$0xff]  ;;  %v129_v14 = vld [vmem:[%s515_s3 + $0x28] sm:$0xff] }
   0x5   :  { %343 = vmatpush3.bf16.msra.mxu0 %v340_v3 }
   0x6   :  { %12 = vsyncpa [#allocation3], 0  ;;  %345 = vmatprep.subr.bf16.mxu0 %v344_v6  ;;  %349 = vmatprep.subr.bf16.mxu1 %v348_v10  ;;  %v356_v15 = vpack.c.bf16 %v129_v14, %v128_v13  ;;  %v28_v16 = vld [vmem:[%s512_s0 + $0x8] sm:$0xff]  ;;  %v130_v17 = vld [vmem:[%s515_s3 + $0x30] sm:$0xff]  ;;  %vm139_vm1 = vcmask 523264   ;;  %s395_s9 = smov [#allocation2]  }
   0x7   :  { %351 = vmatpush3.bf16.msra.mxu1 %v348_v10  ;;  %v131_v18 = vld [vmem:[%s515_s3 + $0x38] sm:$0xff]  ;;  %v286_v20 = vld [vmem:[%s514_s2] ss:$0 sm:$0xff]  ;;  %s275_s10 = sshll.u32 %s395_s9, 4  ;;  %s276_s10 = int_to_ptr.vmem [resolvable:$true] %s275_s10 }
   0x8   :  { %353 = vmatprep.subr.bf16.mxu1 %v352_v12  ;;  %v360_v19 = vpack.c.bf16 %v131_v18, %v130_v17  ;;  %v289_v27 = vld [vmem:[%s516_s4] ss:$0 sm:$0xff]  ;;  %s371_s11 = scalar_lea.vmem %s276_s10, 256  ;;  %p376_p1 = scmp.lt.s32.totalorder %s276_s10, %s276_s10 }
   0x9   :  { %347 = vmatpush3.bf16.msra.mxu0 %v344_v6  ;;  %v292_v53 = vld [vmem:[%s517_s5] ss:$0 sm:$0xff]  ;;  %p372_p0 = scmp.ne.s32.totalorder %s276_s10, %s371_s11  ;;  %p377_p2 = scmp.lt.s32.totalorder %s371_s11, %s371_s11 }
   0xa   :  { %v293_v55 = vld [vmem:[%s518_s6] ss:$0 sm:$0xff] }
   0xb   :  { %355 = vmatpush3.bf16.msra.mxu1 %v352_v12  ;;  %p378_p3 = por %p377_p2, %p376_p1 }
   0xc   :  { %319 = vmatmul.mubr.msk.f32.vlgmr.msra.gmra.mrb[0].mxu0 %vm40_vm0, %v28_v16  ;;  %357 = vmatprep.subr.bf16.mxu1 %v356_v15 }
   0xd   :  { %p379_p4 = pnand %p378_p3, %p372_p0 }
   0xf   :  { %359 = vmatpush3.bf16.msra.mxu1 %v356_v15 }
  0x10   :  { %361 = vmatprep.subr.bf16.mxu1 %v360_v19 }
  0x13   :  { %363 = vmatpush3.bf16.msra.mxu1 %v360_v19 }
  0xdf   :  { %v320_v21 = vpop.f32.mrb[0].mxu0 }
  0xe0   :  { %v119_v22 = vadd.f32 %v320_v21, %v286_v20  ;;  %v113_v23 = vpop.f32.mrb[1].mxu0 }
  0xe1   :  { %v114_v24 = vadd.f32 %v286_v20, %v113_v23 }
  0xe2   :  { %v123_v26 = vmax.f32 %v119_v22, 0.0 }
  0xe3   :  { %v122_v25 = vmax.f32 %v114_v24, 0.0 }
  0xe5   :  { %337 = vmatprep.mubr.msk.f32.mxu1 %vm139_vm1, %v122_v25 }
  0xe6   :  { %338 = vmatmul.mubr.msk.f32.vlgmr.msra.gmra.mrb[0].mxu1 %vm139_vm1, %v123_v26 }
 0x1b9   :  { %v339_v28 = vpop.f32.mrb[0].mxu1 }
 0x1ba   :  { %v212_v29 = vpop.f32.mrb[1].mxu1  ;;  %v218_v30 = vadd.f32 %v339_v28, %v289_v27 }
 0x1bb   :  { %v213_v31 = vadd.f32 %v289_v27, %v212_v29 }
 0x1bc   :  { %v222_v34 = vadd.f32 %v218_v30, %v28_v16 }
 0x1bd   :  { %v221_v32 = vadd.f32 %v213_v31, %v27_v5 }
 0x1be   :  { %v226_v35 = vsel %vm40_vm0, %v222_v34, 0.0 }
 0x1bf   :  { %v223_v33 = vsel %vm40_vm0, %v221_v32, 0.0 }
 0x1c0   :  { %224 = vadd.xlane.f32.xlu0 %v223_v33 }
 0x1c4   :  { %227 = vadd.xlane.f32.xlu0 %v226_v35 }
 0x24d   :  { %v225_v36 = vpop.xlane.xlu0 %224 }
 0x24e   :  { %v230_v37 = vmul.f32 0.03125, %v225_v36 }
 0x250   :  { %v232_v38 = vsub.f32 %v221_v32, %v230_v37 }
 0x251   :  { %v228_v39 = vpop.xlane.xlu0 %227 }
 0x252   :  { %v231_v40 = vmul.f32 0.03125, %v228_v39  ;;  %v234_v41 = vmul.f32 %v232_v38, %v232_v38 }
 0x254   :  { %v233_v42 = vsub.f32 %v222_v34, %v231_v40  ;;  %v236_v43 = vsel %vm40_vm0, %v234_v41, 0.0 }
 0x255   :  { %237 = vadd.xlane.f32.xlu1 %v236_v43 }
 0x256   :  { %v235_v44 = vmul.f32 %v233_v42, %v233_v42 }
 0x258   :  { %v239_v45 = vsel %vm40_vm0, %v235_v44, 0.0 }
 0x259   :  { %240 = vadd.xlane.f32.xlu1 %v239_v45 }
 0x2e2   :  { %v238_v46 = vpop.xlane.xlu1 %237 }
 0x2e3   :  { %v242_v47 = vmul.f32 0.03125, %v238_v46 }
 0x2e5   :  { %v244_v48 = vadd.f32 1e-05, %v242_v47 }
 0x2e6   :  { %v241_v49 = vpop.xlane.xlu1 %240 }
 0x2e7   :  { %367 = vrsqrt.f32 %v244_v48  ;;  %v243_v50 = vmul.f32 0.03125, %v241_v49 }
 0x2e9   :  { %v245_v51 = vadd.f32 1e-05, %v243_v50 }
 0x2eb   :  { %369 = vrsqrt.f32 %v245_v51 }
 0x2f1   :  { %v368_v52 = vpop.eup %367 }
 0x2f2   :  { %v248_v54 = vmul.f32 %v368_v52, %v232_v38 }
 0x2f4   :  { %v257_v56 = vmul.f32 %v292_v53, %v248_v54 }
 0x2f5   :  { %v370_v57 = vpop.eup %369 }
 0x2f6   :  { %v249_v58 = vmul.f32 %v370_v57, %v233_v42  ;;  %v266_v59 = vadd.f32 %v293_v55, %v257_v56 }
 0x2f8   :  { %v258_v60 = vmul.f32 %v292_v53, %v249_v58  ;;  %268 = vst.msk [vmem:[#allocation2] sm:$0xff] %vm40_vm0, %v266_v59 }
 0x2fa   :  { %v267_v61 = vadd.f32 %v293_v55, %v258_v60 }
 0x2fc   :  { %269 = vst.msk [vmem:[#allocation2 + $0x8] sm:$0xff] %vm40_vm0, %v267_v61 }
 0x2fd   :  { %382 = shalt.err (!%p379_p4)
}
 0x2fe   :  { %s383_s12 = scalar_lea.hbm %s519_s7, 256 }
 0x2ff   :  { %p384_p5 = scmp.ne.s32.totalorder %s519_s7, %s383_s12  ;;  %p387_p6 = scmp.lt.u32.totalorder %s383_s12, %s519_s7 }
 0x301   :  { %p389_p7 = pnand %p387_p6, %p384_p5 }
 0x303   :  { %392 = shalt.err (!%p389_p7)
}
 0x304   :  { %s396_s1 = smov 128   ;;  %s397_s17 = smov 8  }
 0x305   :  { %281 = dma.vmem_to_hbm [thread:$0]  %s276_s10, 256, %s519_s7, [#allocation3], %s396_s1, %s396_s1, %s397_s17  }
 0x306   :  { %393 = dma.done.wait [#allocation3], 256  }
 0x307   :  { %394 = vsyncadd [#allocation3], 4294967040 }
 0x308   :  { %285 = vsyncpa [#allocation3], 1 }

// kernel: tokenformer_decoder_forward.11
= control target key start
LH: loop header
LB: loop body
LE: loop exit
PB: predicated region body
PF: predicated region fallthrough
CT: control target
= control target key end

     0   :  { %vm50_vm0 = vcmask 261120   ;;  %v833_v16 = vmov 0.0   ;;  %vm834_vm1 = vmmov 0   ;;  %vm378_vm2 = vcmask 64512   ;;  %s994_s4 = inlined_call_operand.vmem [shape: f32[32,64], index: 4, kind: input, shape index: {}]   ;;  %s995_s2 = inlined_call_operand.vmem [shape: f32[32,32], index: 2, kind: input, shape index: {}]   ;;  %s996_s1 = inlined_call_operand.vmem [shape: f32[2,8,32], index: 1, kind: input, shape index: {}]   ;;  %s997_s0 = inlined_call_operand.vmem [shape: f32[2,8,32], index: 0, kind: input, shape index: {}]   ;;  %s998_s5 = inlined_call_operand.vmem [shape: f32[1,64], index: 5, kind: input, shape index: {}]   ;;  %s999_s3 = inlined_call_operand.vmem [shape: f32[1,32], index: 3, kind: input, shape index: {}]   ;;  %s1000_s6 = inlined_call_operand.vmem [shape: f32[32,32], index: 6, kind: input, shape index: {}]   ;;  %s1001_s7 = inlined_call_operand.vmem [shape: f32[1,32], index: 7, kind: input, shape index: {}]   ;;  %s1002_s8 = inlined_call_operand.vmem [shape: f32[1,32], index: 8, kind: input, shape index: {}]   ;;  %s1003_s9 = inlined_call_operand.vmem [shape: f32[1,32], index: 9, kind: input, shape index: {}]   ;;  %s1004_s10 = inlined_call_operand.vmem [shape: f32[2,8,32], index: 10, kind: output, shape index: {}]  }
   0x1   :  { %v132_v0 = vld [vmem:[%s994_s4] sm:$0xff]  ;;  %v133_v1 = vld [vmem:[%s994_s4 + $0x8] sm:$0xff]  ;;  %v134_v5 = vld [vmem:[%s994_s4 + $0x10] sm:$0xff] }
   0x2   :  { %v39_v2 = vld [vmem:[%s995_s2] sm:$0xff]  ;;  %v802_v3 = vpack.c.bf16 %v133_v1, %v132_v0  ;;  %v40_v4 = vld [vmem:[%s995_s2 + $0x8] sm:$0xff]  ;;  %v135_v6 = vld [vmem:[%s994_s4 + $0x18] sm:$0xff] }
   0x3   :  { %v794_v7 = vpack.c.bf16 %v40_v4, %v39_v2  ;;  %v806_v8 = vpack.c.bf16 %v135_v6, %v134_v5  ;;  %v41_v9 = vld [vmem:[%s995_s2 + $0x10] sm:$0xff]  ;;  %v42_v10 = vld [vmem:[%s995_s2 + $0x18] sm:$0xff]  ;;  %v37_v11 = vld [vmem:[%s996_s1] sm:$0xff] }
   0x4   :  { %803 = vmatprep.subr.bf16.mxu1 %v802_v3  ;;  %v798_v12 = vpack.c.bf16 %v42_v10, %v41_v9  ;;  %760 = vmatprep.mubr.msk.f32.mxu1 %vm50_vm0, %v37_v11  ;;  %v922_v13 = vld [vmem:[%s997_s0] sm:$0xff]  ;;  %v38_v14 = vld [vmem:[%s996_s1 + $0x8] sm:$0xff]  ;;  %v555_v56 = vld [vmem:[%s1000_s6 + $0x10] sm:$0xff] }
   0x5   :  { %805 = vmatpush3.bf16.msra.mxu1 %v802_v3  ;;  %795 = vmatprep.subr.bf16.mxu0 %v794_v7  ;;  %v932_v15 = vld [vmem:[%s997_s0 + $0x8] sm:$0xff]  ;;  %v701_v17 = vld [vmem:[%s998_s5] ss:$0 sm:$0xff]  ;;  %v556_v57 = vld [vmem:[%s1000_s6 + $0x18] sm:$0xff] }
   0x6   :  { %797 = vmatpush3.bf16.msra.mxu0 %v794_v7  ;;  %807 = vmatprep.subr.bf16.mxu1 %v806_v8  ;;  %v698_v19 = vld [vmem:[%s999_s3] ss:$0 sm:$0xff]  ;;  %s835_s3 = smov 96   ;;  %v554_v47 = vld [vmem:[%s1000_s6 + $0x8] sm:$0xff]  ;;  %v814_v58 = vpack.c.bf16 %v556_v57, %v555_v56 }
   0x7   :  { %799 = vmatprep.subr.bf16.mxu0 %v798_v12  ;;  %749 = vmatprep.mubr.msk.f32.mxu0 %vm50_vm0, %v922_v13  ;;  %v553_v46 = vld [vmem:[%s1000_s6] sm:$0xff] }
   0x8   :  { %v810_v48 = vpack.c.bf16 %v554_v47, %v553_v46  ;;  %v710_v63 = vld [vmem:[%s1001_s7] ss:$0 sm:$0xff] }
   0x9   :  { %809 = vmatpush3.bf16.msra.mxu1 %v806_v8 }
   0xa   :  { %801 = vmatpush3.bf16.msra.mxu0 %v798_v12  ;;  %763 = vmatprep.subr.mxu1 %v833_v16 }
   0xb   :  { %773 = vmatprep.subr.mxu0 %v833_v16 }
   0xc   :  { %761 = vmatmul.mubr.msk.f32.vlgmr.msra.gmra.mrb[0].mxu1 %vm50_vm0, %v38_v14 }
   0xd   :  { %750 = vmatmul.mubr.msk.f32.vlgmr.msra.gmra.mrb[0].mxu0 %vm50_vm0, %v932_v15  ;;  %765 = vmatprep.mubr.msk.f32.mxu1 %vm834_vm1, %v833_v16 }
   0xe   :  { %775 = vmatprep.mubr.msk.f32.mxu0 %vm834_vm1, %v833_v16 }
  0xdf   :  { %v762_v18 = vpop.f32.mrb[0].mxu1 }
  0xe0   :  { %v215_v20 = vpop.f32.mrb[1].mxu1  ;;  %v751_v21 = vpop.f32.mrb[0].mxu0  ;;  %v221_v25 = vadd.f32 %v762_v18, %v701_v17 }
  0xe1   :  { %v216_v22 = vadd.f32 %v701_v17, %v215_v20  ;;  %v123_v23 = vpop.f32.mrb[1].mxu0  ;;  %v129_v26 = vadd.f32 %v751_v21, %v698_v19 }
  0xe2   :  { %v124_v24 = vadd.f32 %v698_v19, %v123_v23 }
  0xe3   :  { %764 = vmatpush3.xpose.msk.msra.mxu1 %vm50_vm0, %v216_v22 }
  0xe4   :  { %768 = vmatprep.subr.mxu1 %v833_v16 }
  0xe6   :  { %766 = vmatmul.mubr.msk.f32.vlgmr.msra.gmra.mrb[2].mxu1 %vm50_vm0, %v124_v24 }
  0xe7   :  { %769 = vmatpush3.xpose.msk.msra.mxu1 %vm50_vm0, %v221_v25  ;;  %770 = vmatprep.mubr.msk.f32.mxu1 %vm834_vm1, %v833_v16 }
  0xe8   :  { %778 = vmatprep.subr.mxu1 %v833_v16 }
  0xea   :  { %771 = vmatmul.mubr.msk.f32.vlgmr.msra.gmra.mrb[4].mxu1 %vm50_vm0, %v129_v26 }
  0xeb   :  { %780 = vmatprep.mubr.msk.f32.mxu1 %vm834_vm1, %v833_v16 }
 0x1b9   :  { %v296_v27 = vpop.f32.mrb[2].mxu1 }
 0x1ba   :  { %v376_v28 = vmul.f32 0.17677669, %v296_v27  ;;  %v767_v29 = vpop.f32.mrb[3].mxu1 }
 0x1bc   :  { %v379_v30 = vsel %vm378_vm2, %v376_v28, -inf }
 0x1bd   :  { %380 = vmax.xlane.f32.xlu0 %v379_v30  ;;  %v372_v31 = vpop.f32.mrb[4].mxu1 }
 0x1be   :  { %v377_v32 = vmul.f32 0.17677669, %v372_v31  ;;  %v772_v33 = vpop.f32.mrb[5].mxu1 }
 0x1c0   :  { %v382_v34 = vsel %vm378_vm2, %v377_v32, -inf }
 0x1c1   :  { %383 = vmax.xlane.f32.xlu0 %v382_v34 }
 0x1d7   :  { %401 = vrot.lane.b32.xlu0 %v216_v22, %s835_s3 }
 0x24a   :  { %v381_v35 = vpop.xlane.xlu0 %380 }
 0x24b   :  { %v385_v36 = vsub.f32 %v376_v28, %v381_v35  ;;  %v714_v28 = vld [vmem:[%s1003_s9] ss:$0 sm:$0xff] }
 0x24d   :  { %v387_v37 = vmul.f32 1.442695, %v385_v36 }
 0x24e   :  { %v384_v38 = vpop.xlane.xlu0 %383 }
 0x24f   :  { %821 = vpow2.f32 %v387_v37  ;;  %v386_v39 = vsub.f32 %v377_v32, %v384_v38 }
 0x251   :  { %v389_v40 = vmul.f32 1.442695, %v386_v39 }
 0x252   :  { %v402_v41 = vpop.permute.xlu0 %401 }
 0x253   :  { %823 = vpow2.f32 %v389_v40  ;;  %774 = vmatpush3.msra.mxu0 %v402_v41 }
 0x254   :  { %811 = vmatprep.subr.bf16.mxu0 %v810_v48 }
 0x259   :  { %v822_v42 = vpop.eup %821 }
 0x25a   :  { %v391_v43 = vsel %vm378_vm2, %v822_v42, 0.0 }
 0x25b   :  { %392 = vadd.xlane.f32.xlu1 %v391_v43 }
 0x25d   :  { %v824_v44 = vpop.eup %823 }
 0x25e   :  { %v394_v45 = vsel %vm378_vm2, %v824_v44, 0.0 }
 0x25f   :  { %395 = vadd.xlane.f32.xlu1 %v394_v45 }
 0x270   :  { %477 = vrot.lane.b32.xlu1 %v221_v25, %s835_s3  ;;  %v713_v25 = vld [vmem:[%s1002_s8] ss:$0 sm:$0xff] }
 0x2e8   :  { %v393_v49 = vpop.xlane.xlu1 %392 }
 0x2e9   :  { %825 = vrcp.f32 %v393_v49 }
 0x2ec   :  { %v396_v50 = vpop.xlane.xlu1 %395 }
 0x2ed   :  { %827 = vrcp.f32 %v396_v50 }
 0x2f0   :  { %v478_v51 = vpop.permute.xlu1 %477 }
 0x2f1   :  { %779 = vmatpush3.msra.mxu1 %v478_v51 }
 0x2f3   :  { %v826_v52 = vpop.eup %825 }
 0x2f4   :  { %v398_v53 = vmul.f32 %v826_v52, %v822_v42 }
 0x2f6   :  { %776 = vmatmul.mubr.msk.f32.vlgmr.msra.gmra.mrb[2].mxu0 %vm378_vm2, %v398_v53 }
 0x2f7   :  { %v828_v54 = vpop.eup %827  ;;  %813 = vmatpush3.bf16.msra.mxu0 %v810_v48 }
 0x2f8   :  { %v400_v55 = vmul.f32 %v828_v54, %v824_v44  ;;  %815 = vmatprep.subr.bf16.mxu0 %v814_v58 }
 0x2fa   :  { %781 = vmatmul.mubr.msk.f32.vlgmr.msra.gmra.mrb[6].mxu1 %vm378_vm2, %v400_v55 }
 0x2fb   :  { %817 = vmatpush3.bf16.msra.mxu0 %v814_v58 }
 0x3c9   :  { %v473_v59 = vpop.f32.mrb[2].mxu0 }
 0x3ca   :  { %v777_v60 = vpop.f32.mrb[3].mxu0  ;;  %791 = vmatprep.mubr.msk.f32.mxu0 %vm50_vm0, %v473_v59 }
 0x3cd   :  { %v549_v61 = vpop.f32.mrb[6].mxu1 }
 0x3ce   :  { %v782_v62 = vpop.f32.mrb[7].mxu1  ;;  %792 = vmatmul.mubr.msk.f32.vlgmr.msra.gmra.mrb[4].mxu0 %vm50_vm0, %v549_v61 }
 0x4a1   :  { %v793_v0 = vpop.f32.mrb[4].mxu0 }
 0x4a2   :  { %v642_v1 = vadd.f32 %v793_v0, %v710_v63  ;;  %v636_v2 = vpop.f32.mrb[5].mxu0 }
 0x4a3   :  { %v637_v3 = vadd.f32 %v710_v63, %v636_v2 }
 0x4a4   :  { %v646_v4 = vadd.f32 %v642_v1, %v932_v15 }
 0x4a5   :  { %v645_v5 = vadd.f32 %v637_v3, %v922_v13 }
 0x4a6   :  { %v650_v6 = vsel %vm50_vm0, %v646_v4, 0.0 }
 0x4a7   :  { %651 = vadd.xlane.f32.xlu0 %v650_v6  ;;  %v647_v7 = vsel %vm50_vm0, %v645_v5, 0.0 }
 0x4a8   :  { %648 = vadd.xlane.f32.xlu1 %v647_v7 }
 0x534   :  { %v652_v8 = vpop.xlane.xlu0 %651 }
 0x535   :  { %v655_v9 = vmul.f32 0.03125, %v652_v8  ;;  %v649_v10 = vpop.xlane.xlu1 %648 }
 0x536   :  { %v654_v11 = vmul.f32 0.03125, %v649_v10 }
 0x537   :  { %v657_v12 = vsub.f32 %v646_v4, %v655_v9 }
 0x538   :  { %v656_v14 = vsub.f32 %v645_v5, %v654_v11 }
 0x539   :  { %v659_v16 = vmul.f32 %v657_v12, %v657_v12 }
 0x53a   :  { %v658_v17 = vmul.f32 %v656_v14, %v656_v14 }
 0x53b   :  { %v663_v18 = vsel %vm50_vm0, %v659_v16, 0.0 }
 0x53c   :  { %664 = vadd.xlane.f32.xlu1 %v663_v18  ;;  %v660_v15 = vsel %vm50_vm0, %v658_v17, 0.0 }
 0x53d   :  { %661 = vadd.xlane.f32.xlu0 %v660_v15 }
 0x5c9   :  { %v665_v13 = vpop.xlane.xlu1 %664 }
 0x5ca   :  { %v667_v19 = vmul.f32 0.03125, %v665_v13  ;;  %v662_v20 = vpop.xlane.xlu0 %661 }
 0x5cb   :  { %v666_v21 = vmul.f32 0.03125, %v662_v20 }
 0x5cc   :  { %v669_v22 = vadd.f32 1e-05, %v667_v19 }
 0x5cd   :  { %v668_v23 = vadd.f32 1e-05, %v666_v21 }
 0x5ce   :  { %829 = vrsqrt.f32 %v669_v22 }
 0x5cf   :  { %831 = vrsqrt.f32 %v668_v23 }
 0x5d8   :  { %v830_v24 = vpop.eup %829 }
 0x5d9   :  { %v832_v26 = vpop.eup %831  ;;  %v673_v27 = vmul.f32 %v830_v24, %v657_v12 }
 0x5da   :  { %v672_v29 = vmul.f32 %v832_v26, %v656_v14 }
 0x5db   :  { %v682_v30 = vmul.f32 %v713_v25, %v673_v27 }
 0x5dc   :  { %v681_v31 = vmul.f32 %v713_v25, %v672_v29 }
 0x5dd   :  { %v691_v32 = vadd.f32 %v714_v28, %v682_v30 }
 0x5de   :  { %v690_v33 = vadd.f32 %v714_v28, %v681_v31 }
 0x5df   :  { %693 = vst.msk [vmem:[%s1004_s10 + $0x8] sm:$0xff] %vm50_vm0, %v691_v32 }
 0x5e0   :  { %692 = vst.msk [vmem:[%s1004_s10] sm:$0xff] %vm50_vm0, %v690_v33 }

</bundles_post_ra>
